<compile_context>
chip_gen: v6e
topology: v6e:2x2x1
jax: 0.10.0
libtpu: 0.0.40
codegen_flags: <defaults>
</compile_context>

<pallas_src>
import functools

import jax
import jax.numpy as jnp
from jax.experimental import pallas as pl
from jax.experimental.pallas import tpu as pltpu

_PAD = 8  # halo rows above/below the flattened (OH*OW) map; must be >= OW + 1


# ---------------- fused Pallas kernel (entire network, one call) ----------------

def _fused_net_kernel(p1_ref, w1_ref, w2_ref, w3_ref, b_ref, o_ref, vpad_ref, *, oh, ow):
    """Whole network in one gridless kernel; every operand is a full-array VMEM block.

    p1_ref   : (M, 9*Cin)   im2col patches of the input for conv1 (stride 2, pad 3)
    w1_ref   : (9*Cin, C)   conv1 weights in im2col layout
    w2_ref   : (9*C, C)     conv2 weights in im2col layout (shared for v2 and v4)
    w3_ref   : (9*C, C)     conv3 weights in im2col layout
    b_ref    : (3, C)       packed biases [b1; b2; b3]
    o_ref    : (M, C)       final result  (v3 + conv2(v3)) + v1
    vpad_ref : (2*_PAD+M, C) scratch: zero-halo-padded activation for tap shifts
    """
    f32 = jnp.float32
    m = oh * ow
    c = o_ref.shape[-1]

    # Lane-replicated flat row index and the two w-boundary masks (shared by all three
    # stride-1 convs).  h-boundaries are handled by the zero halo rows in vpad_ref.
    ridx = jax.lax.broadcasted_iota(jnp.int32, (m, c), 0)
    is_w_first = ridx == 0
    is_w_last = ridx == (ow - 1)
    for hh in range(1, oh):                       # static, tiny unroll
        is_w_first = jnp.logical_or(is_w_first, ridx == hh * ow)
        is_w_last = jnp.logical_or(is_w_last, ridx == hh * ow + ow - 1)
    zeros = jnp.zeros((m, c), f32)
    ones = jnp.ones((m, c), f32)
    mask_l = jnp.where(is_w_first, zeros, ones)   # kills taps reading column w-1 at w == 0
    mask_r = jnp.where(is_w_last, zeros, ones)    # kills taps reading column w+1 at w == ow-1

    # Zero the halo once; rows [_PAD, _PAD+m) are overwritten by every conv below.
    vpad_ref[...] = jnp.zeros_like(vpad_ref)

    def conv_s1(v, w_ref, b_row):
        """Stride-1 pad-1 3x3 conv on a VMEM-resident (m, c) activation.

        In-kernel im2col: 9 sublane-shifted copies of v (read back from the zero-padded
        scratch at static offsets), w-boundary masked, concatenated along lanes into a
        lane-dense (m, 9c) matrix -> ONE MXU dot against the pre-packed (9c, c) weights.
        """
        vpad_ref[pl.ds(_PAD, m), :] = v
        parts = []
        for di in (-1, 0, 1):
            for dj in (-1, 0, 1):
                part = vpad_ref[pl.ds(_PAD + di * ow + dj, m), :]
                if dj == -1:
                    part = part * mask_l
                elif dj == 1:
                    part = part * mask_r
                parts.append(part)
        vcat = jnp.concatenate(parts, axis=1)                      # (m, 9c)
        return jnp.dot(vcat, w_ref[...], preferred_element_type=f32) + b_row

    # conv1: one MXU matmul on the wrapper-built im2col patches + bias.
    v1 = jnp.dot(p1_ref[...], w1_ref[...], preferred_element_type=f32) + b_ref[0:1, :]

    b2 = b_ref[1:2, :]
    b3 = b_ref[2:3, :]
    v2 = conv_s1(v1, w2_ref, b2)
    v3 = conv_s1(v2, w3_ref, b3)
    v4 = conv_s1(v3, w2_ref, b2)        # conv2 applied again (shared weights)
    o_ref[...] = (v3 + v4) + v1         # v5 = v3 + v4 ; return v5 + v1


# ---------------- wrapper glue ----------------

@jax.jit
def _fused_forward(x_nchw, w1_mat, w2_full, w3_full, b_stack):
    N, Cin, H, W = x_nchw.shape
    K, stride, pad = 3, 2, 3
    OH = (H + 2 * pad - K) // stride + 1
    OW = (W + 2 * pad - K) // stride + 1
    C = w1_mat.shape[1]
    M = N * OH * OW
    assert N == 1, "in-kernel tap shifts assume a single flattened (OH, OW) map"
    assert OW + 1 <= _PAD, "halo too small for this spatial size"

    # conv1 im2col on the raw input (tiny; fused by XLA under jit).
    # Column order (i, j, c) matches the w1_mat layout built in PallasModel.__init__.
    x = jnp.transpose(x_nchw, (0, 2, 3, 1))                      # NCHW -> NHWC
    xp = jnp.pad(x, ((0, 0), (pad, pad), (pad, pad), (0, 0)))
    cols = [xp[:, i:i + stride * OH:stride, j:j + stride * OW:stride, :]
            for i in range(K) for j in range(K)]
    patches1 = jnp.concatenate(cols, axis=-1).reshape(M, K * K * Cin)

    # 4 MXU dots total: conv1 (M,9Cin)@(9Cin,C) + 3x (M,9C)@(9C,C), plus elementwise adds.
    flops = 2 * M * (K * K * Cin) * C + 3 * (2 * M * (9 * C) * C) + 4 * M * C
    bytes_accessed = 4 * (patches1.size + w1_mat.size + w2_full.size +
                          w3_full.size + b_stack.size + M * C)

    vspec = pl.BlockSpec(memory_space=pltpu.MemorySpace.VMEM)
    kernel = functools.partial(_fused_net_kernel, oh=OH, ow=OW)
    out = pl.pallas_call(
        kernel,
        out_shape=jax.ShapeDtypeStruct((M, C), jnp.float32),
        in_specs=[vspec] * 5,          # tiny problem: whole arrays in VMEM, no grid
        out_specs=vspec,
        scratch_shapes=[pltpu.VMEM((2 * _PAD + M, C), jnp.float32)],
        cost_estimate=pl.CostEstimate(flops=flops, transcendentals=0,
                                      bytes_accessed=bytes_accessed),
    )(patches1, w1_mat, w2_full, w3_full, b_stack)
    return jnp.transpose(out.reshape(N, OH, OW, C), (0, 3, 1, 2))  # NHWC -> NCHW


# ---------------- Model ----------------

class PallasModel:
    """Pallas port of the fuzzed torch Model (see TODO(synk) note at top)."""

    def __init__(self, key, cin=1, c=32):
        ks = jax.random.split(key, 6)

        def init_conv(kw, kb, cin_, cout_, k=3):
            # PyTorch Conv2d default init: U(-1/sqrt(fan_in), 1/sqrt(fan_in))
            fan_in = cin_ * k * k
            bound = 1.0 / (fan_in ** 0.5)
            w = jax.random.uniform(kw, (cout_, cin_, k, k), jnp.float32, -bound, bound)
            bias = jax.random.uniform(kb, (cout_,), jnp.float32, -bound, bound)
            return w, bias

        self.w1, self.b1 = init_conv(ks[0], ks[1], cin, c)   # conv1: stride 2, pad 3
        self.w2, self.b2 = init_conv(ks[2], ks[3], c, c)     # conv2: stride 1, pad 1 (shared)
        self.w3, self.b3 = init_conv(ks[4], ks[5], c, c)     # conv3: stride 1, pad 1

        # ---- packed, kernel-ready parameters (built once, not per forward) ----
        # im2col layout: w_full[(i*3+j)*cin + ci, co] == w[co, ci, i, j]
        def pack(w):
            cout_, cin_, kh, kw = w.shape
            return jnp.transpose(w, (2, 3, 1, 0)).reshape(kh * kw * cin_, cout_)

        self._w1_mat = pack(self.w1)       # (9*cin, c)
        self._w2_full = pack(self.w2)      # (9*c, c)
        self._w3_full = pack(self.w3)      # (9*c, c)
        self._b_stack = jnp.stack([self.b1, self.b2, self.b3]).astype(jnp.float32)

    def __call__(self, x_nchw):
        N, _, _, _ = x_nchw.shape
        assert N == 1, "kernel packing assumes batch 1 (matches the fuzz input)"
        return _fused_forward(x_nchw, self._w1_mat, self._w2_full, self._w3_full,
                              self._b_stack)


# ---------------- Pure-JAX reference for validation ----------------

def _ref_conv(x_nchw, w, b, stride, pad):
    y = jax.lax.conv_general_dilated(
        x_nchw, w, window_strides=(stride, stride),
        padding=((pad, pad), (pad, pad)),
        dimension_numbers=("NCHW", "OIHW", "NCHW"))
    return y + b.reshape(1, -1, 1, 1)


def _ref_forward(model, x_nchw):
    v1 = _ref_conv(x_nchw, model.w1, model.b1, 2, 3)
    v2 = _ref_conv(v1, model.w2, model.b2, 1, 1)
    v3 = _ref_conv(v2, model.w3, model.b3, 1, 1)
    v4 = _ref_conv(v3, model.w2, model.b2, 1, 1)
    return (v3 + v4) + v1


if __name__ == "__main__":
    key = jax.random.PRNGKey(0)
    kx, kp = jax.random.split(key)

    # Input analogous to the fuzz program's x = torch.randn(1, 5, 8, 8), with channels
    # unified to 1 so that conv1 (in_channels=1) actually applies.
    x = jax.random.normal(kx, (1, 1, 8, 8), jnp.float32)

    model = PallasModel(kp)
    y = jax.block_until_ready(model(x))
    assert y.shape == (1, 32, 6, 6), y.shape

    y_ref = jax.block_until_ready(_ref_forward(model, x))
    err = float(jnp.max(jnp.abs(y - y_ref)))
    tol = 1e-4 * (1.0 + float(jnp.max(jnp.abs(y_ref))))   # all-f32 path -> tight tolerance
    assert err < tol, f"mismatch: {err} (tol {tol})"

    print("KERNEL_OK")
</pallas_src>

<mosaic_0001>
module attributes {stable_mosaic.version = 11 : i64} {
  func.func @_fused_net_kernel(%arg0: memref<36x9xf32, #tpu.memory_space<vmem>>, %arg1: memref<9x32xf32, #tpu.memory_space<vmem>>, %arg2: memref<288x32xf32, #tpu.memory_space<vmem>>, %arg3: memref<288x32xf32, #tpu.memory_space<vmem>>, %arg4: memref<3x32xf32, #tpu.memory_space<vmem>>, %arg5: memref<36x32xf32, #tpu.memory_space<vmem>>, %arg6: memref<52x32xf32, #tpu.memory_space<vmem>>) attributes {dimension_semantics = [], scalar_prefetch = 0 : i64, scratch_operands = 1 : i64, tpu.core_type = #tpu.core_type<tc>} {
    %0 = tpu.iota {dimensions = array<i32: 0>} : vector<36x32xi32>
    %c0_i32 = arith.constant 0 : i32
    %1 = vector.broadcast %c0_i32 : i32 to vector<36x32xi32>
    %2 = arith.cmpi eq, %0, %1 : vector<36x32xi32>
    %c5_i32 = arith.constant 5 : i32
    %3 = vector.broadcast %c5_i32 : i32 to vector<36x32xi32>
    %4 = arith.cmpi eq, %0, %3 : vector<36x32xi32>
    %c6_i32 = arith.constant 6 : i32
    %5 = vector.broadcast %c6_i32 : i32 to vector<36x32xi32>
    %6 = arith.cmpi eq, %0, %5 : vector<36x32xi32>
    %7 = arith.ori %2, %6 : vector<36x32xi1>
    %c11_i32 = arith.constant 11 : i32
    %8 = vector.broadcast %c11_i32 : i32 to vector<36x32xi32>
    %9 = arith.cmpi eq, %0, %8 : vector<36x32xi32>
    %10 = arith.ori %4, %9 : vector<36x32xi1>
    %c12_i32 = arith.constant 12 : i32
    %11 = vector.broadcast %c12_i32 : i32 to vector<36x32xi32>
    %12 = arith.cmpi eq, %0, %11 : vector<36x32xi32>
    %13 = arith.ori %7, %12 : vector<36x32xi1>
    %c17_i32 = arith.constant 17 : i32
    %14 = vector.broadcast %c17_i32 : i32 to vector<36x32xi32>
    %15 = arith.cmpi eq, %0, %14 : vector<36x32xi32>
    %16 = arith.ori %10, %15 : vector<36x32xi1>
    %c18_i32 = arith.constant 18 : i32
    %17 = vector.broadcast %c18_i32 : i32 to vector<36x32xi32>
    %18 = arith.cmpi eq, %0, %17 : vector<36x32xi32>
    %19 = arith.ori %13, %18 : vector<36x32xi1>
    %c23_i32 = arith.constant 23 : i32
    %20 = vector.broadcast %c23_i32 : i32 to vector<36x32xi32>
    %21 = arith.cmpi eq, %0, %20 : vector<36x32xi32>
    %22 = arith.ori %16, %21 : vector<36x32xi1>
    %c24_i32 = arith.constant 24 : i32
    %23 = vector.broadcast %c24_i32 : i32 to vector<36x32xi32>
    %24 = arith.cmpi eq, %0, %23 : vector<36x32xi32>
    %25 = arith.ori %19, %24 : vector<36x32xi1>
    %c29_i32 = arith.constant 29 : i32
    %26 = vector.broadcast %c29_i32 : i32 to vector<36x32xi32>
    %27 = arith.cmpi eq, %0, %26 : vector<36x32xi32>
    %28 = arith.ori %22, %27 : vector<36x32xi1>
    %c30_i32 = arith.constant 30 : i32
    %29 = vector.broadcast %c30_i32 : i32 to vector<36x32xi32>
    %30 = arith.cmpi eq, %0, %29 : vector<36x32xi32>
    %31 = arith.ori %25, %30 : vector<36x32xi1>
    %c35_i32 = arith.constant 35 : i32
    %32 = vector.broadcast %c35_i32 : i32 to vector<36x32xi32>
    %33 = arith.cmpi eq, %0, %32 : vector<36x32xi32>
    %34 = arith.ori %28, %33 : vector<36x32xi1>
    %cst = arith.constant 0.000000e+00 : f32
    %35 = vector.broadcast %cst : f32 to vector<36x32xf32>
    %cst_0 = arith.constant 1.000000e+00 : f32
    %36 = vector.broadcast %cst_0 : f32 to vector<36x32xf32>
    %37 = arith.select %31, %35, %36 : vector<36x32xi1>, vector<36x32xf32>
    %38 = arith.select %34, %35, %36 : vector<36x32xi1>, vector<36x32xf32>
    %cst_1 = arith.constant 0.000000e+00 : f32
    %39 = vector.broadcast %cst_1 : f32 to vector<52x32xf32>
    %c0 = arith.constant 0 : index
    %c0_2 = arith.constant 0 : index
    %40 = vector.load %arg6[%c0, %c0_2] : memref<52x32xf32, #tpu.memory_space<vmem>>, vector<52x32xf32>
    tpu.vector_store %arg6[%c0, %c0_2], %39 {strides = array<i32>} : memref<52x32xf32, #tpu.memory_space<vmem>>, vector<52x32xf32>,
    %c0_3 = arith.constant 0 : index
    %c0_4 = arith.constant 0 : index
    %41 = vector.load %arg0[%c0_3, %c0_4] : memref<36x9xf32, #tpu.memory_space<vmem>>, vector<36x9xf32>
    %c0_5 = arith.constant 0 : index
    %c0_6 = arith.constant 0 : index
    %42 = vector.load %arg1[%c0_5, %c0_6] : memref<9x32xf32, #tpu.memory_space<vmem>>, vector<9x32xf32>
    %cst_7 = arith.constant dense<0.000000e+00> : vector<36x32xf32>
    %43 = tpu.matmul %41, %42, %cst_7 {dimension_numbers = #tpu.dot_dimension_numbers<[1], [0], [0], [1], [0, 0, 1, 1], [], []>} : vector<36x9xf32>, vector<9x32xf32>, vector<36x32xf32> -> vector<36x32xf32>
    %c0_8 = arith.constant 0 : index
    %c0_9 = arith.constant 0 : index
    %44 = vector.load %arg4[%c0_8, %c0_9] : memref<3x32xf32, #tpu.memory_space<vmem>>, vector<1x32xf32>
    %45 = vector.broadcast %44 : vector<1x32xf32> to vector<36x32xf32>
    %46 = arith.addf %43, %45 : vector<36x32xf32>
    %c1 = arith.constant 1 : index
    %c0_10 = arith.constant 0 : index
    %47 = vector.load %arg4[%c1, %c0_10] : memref<3x32xf32, #tpu.memory_space<vmem>>, vector<1x32xf32>
    %c2 = arith.constant 2 : index
    %c0_11 = arith.constant 0 : index
    %48 = vector.load %arg4[%c2, %c0_11] : memref<3x32xf32, #tpu.memory_space<vmem>>, vector<1x32xf32>
    %c8 = arith.constant 8 : index
    %c0_12 = arith.constant 0 : index
    %49 = vector.load %arg6[%c8, %c0_12] : memref<52x32xf32, #tpu.memory_space<vmem>>, vector<36x32xf32>
    tpu.vector_store %arg6[%c8, %c0_12], %46 {strides = array<i32>} : memref<52x32xf32, #tpu.memory_space<vmem>>, vector<36x32xf32>,
    %c1_13 = arith.constant 1 : index
    %c0_14 = arith.constant 0 : index
    %50 = vector.load %arg6[%c1_13, %c0_14] : memref<52x32xf32, #tpu.memory_space<vmem>>, vector<36x32xf32>
    %51 = arith.mulf %50, %37 : vector<36x32xf32>
    %c2_15 = arith.constant 2 : index
    %c0_16 = arith.constant 0 : index
    %52 = vector.load %arg6[%c2_15, %c0_16] : memref<52x32xf32, #tpu.memory_space<vmem>>, vector<36x32xf32>
    %c3 = arith.constant 3 : index
    %c0_17 = arith.constant 0 : index
    %53 = vector.load %arg6[%c3, %c0_17] : memref<52x32xf32, #tpu.memory_space<vmem>>, vector<36x32xf32>
    %54 = arith.mulf %53, %38 : vector<36x32xf32>
    %c7 = arith.constant 7 : index
    %c0_18 = arith.constant 0 : index
    %55 = vector.load %arg6[%c7, %c0_18] : memref<52x32xf32, #tpu.memory_space<vmem>>, vector<36x32xf32>
    %56 = arith.mulf %55, %37 : vector<36x32xf32>
    %c8_19 = arith.constant 8 : index
    %c0_20 = arith.constant 0 : index
    %57 = vector.load %arg6[%c8_19, %c0_20] : memref<52x32xf32, #tpu.memory_space<vmem>>, vector<36x32xf32>
    %c9 = arith.constant 9 : index
    %c0_21 = arith.constant 0 : index
    %58 = vector.load %arg6[%c9, %c0_21] : memref<52x32xf32, #tpu.memory_space<vmem>>, vector<36x32xf32>
    %59 = arith.mulf %58, %38 : vector<36x32xf32>
    %c13 = arith.constant 13 : index
    %c0_22 = arith.constant 0 : index
    %60 = vector.load %arg6[%c13, %c0_22] : memref<52x32xf32, #tpu.memory_space<vmem>>, vector<36x32xf32>
    %61 = arith.mulf %60, %37 : vector<36x32xf32>
    %c14 = arith.constant 14 : index
    %c0_23 = arith.constant 0 : index
    %62 = vector.load %arg6[%c14, %c0_23] : memref<52x32xf32, #tpu.memory_space<vmem>>, vector<36x32xf32>
    %c15 = arith.constant 15 : index
    %c0_24 = arith.constant 0 : index
    %63 = vector.load %arg6[%c15, %c0_24] : memref<52x32xf32, #tpu.memory_space<vmem>>, vector<36x32xf32>
    %64 = arith.mulf %63, %38 : vector<36x32xf32>
    %65 = tpu.concatenate %51, %52, %54, %56, %57, %59, %61, %62, %64 in 1 : vector<36x32xf32>, vector<36x32xf32>, vector<36x32xf32>, vector<36x32xf32>, vector<36x32xf32>, vector<36x32xf32>, vector<36x32xf32>, vector<36x32xf32>, vector<36x32xf32> -> vector<36x288xf32>
    %c0_25 = arith.constant 0 : index
    %c0_26 = arith.constant 0 : index
    %66 = vector.load %arg2[%c0_25, %c0_26] : memref<288x32xf32, #tpu.memory_space<vmem>>, vector<288x32xf32>
    %cst_27 = arith.constant dense<0.000000e+00> : vector<36x32xf32>
    %67 = tpu.matmul %65, %66, %cst_27 {dimension_numbers = #tpu.dot_dimension_numbers<[1], [0], [0], [1], [0, 0, 1, 1], [], []>} : vector<36x288xf32>, vector<288x32xf32>, vector<36x32xf32> -> vector<36x32xf32>
    %68 = vector.broadcast %47 : vector<1x32xf32> to vector<36x32xf32>
    %69 = arith.addf %67, %68 : vector<36x32xf32>
    %c8_28 = arith.constant 8 : index
    %c0_29 = arith.constant 0 : index
    %70 = vector.load %arg6[%c8_28, %c0_29] : memref<52x32xf32, #tpu.memory_space<vmem>>, vector<36x32xf32>
    tpu.vector_store %arg6[%c8_28, %c0_29], %69 {strides = array<i32>} : memref<52x32xf32, #tpu.memory_space<vmem>>, vector<36x32xf32>,
    %c1_30 = arith.constant 1 : index
    %c0_31 = arith.constant 0 : index
    %71 = vector.load %arg6[%c1_30, %c0_31] : memref<52x32xf32, #tpu.memory_space<vmem>>, vector<36x32xf32>
    %72 = arith.mulf %71, %37 : vector<36x32xf32>
    %c2_32 = arith.constant 2 : index
    %c0_33 = arith.constant 0 : index
    %73 = vector.load %arg6[%c2_32, %c0_33] : memref<52x32xf32, #tpu.memory_space<vmem>>, vector<36x32xf32>
    %c3_34 = arith.constant 3 : index
    %c0_35 = arith.constant 0 : index
    %74 = vector.load %arg6[%c3_34, %c0_35] : memref<52x32xf32, #tpu.memory_space<vmem>>, vector<36x32xf32>
    %75 = arith.mulf %74, %38 : vector<36x32xf32>
    %c7_36 = arith.constant 7 : index
    %c0_37 = arith.constant 0 : index
    %76 = vector.load %arg6[%c7_36, %c0_37] : memref<52x32xf32, #tpu.memory_space<vmem>>, vector<36x32xf32>
    %77 = arith.mulf %76, %37 : vector<36x32xf32>
    %c8_38 = arith.constant 8 : index
    %c0_39 = arith.constant 0 : index
    %78 = vector.load %arg6[%c8_38, %c0_39] : memref<52x32xf32, #tpu.memory_space<vmem>>, vector<36x32xf32>
    %c9_40 = arith.constant 9 : index
    %c0_41 = arith.constant 0 : index
    %79 = vector.load %arg6[%c9_40, %c0_41] : memref<52x32xf32, #tpu.memory_space<vmem>>, vector<36x32xf32>
    %80 = arith.mulf %79, %38 : vector<36x32xf32>
    %c13_42 = arith.constant 13 : index
    %c0_43 = arith.constant 0 : index
    %81 = vector.load %arg6[%c13_42, %c0_43] : memref<52x32xf32, #tpu.memory_space<vmem>>, vector<36x32xf32>
    %82 = arith.mulf %81, %37 : vector<36x32xf32>
    %c14_44 = arith.constant 14 : index
    %c0_45 = arith.constant 0 : index
    %83 = vector.load %arg6[%c14_44, %c0_45] : memref<52x32xf32, #tpu.memory_space<vmem>>, vector<36x32xf32>
    %c15_46 = arith.constant 15 : index
    %c0_47 = arith.constant 0 : index
    %84 = vector.load %arg6[%c15_46, %c0_47] : memref<52x32xf32, #tpu.memory_space<vmem>>, vector<36x32xf32>
    %85 = arith.mulf %84, %38 : vector<36x32xf32>
    %86 = tpu.concatenate %72, %73, %75, %77, %78, %80, %82, %83, %85 in 1 : vector<36x32xf32>, vector<36x32xf32>, vector<36x32xf32>, vector<36x32xf32>, vector<36x32xf32>, vector<36x32xf32>, vector<36x32xf32>, vector<36x32xf32>, vector<36x32xf32> -> vector<36x288xf32>
    %c0_48 = arith.constant 0 : index
    %c0_49 = arith.constant 0 : index
    %87 = vector.load %arg3[%c0_48, %c0_49] : memref<288x32xf32, #tpu.memory_space<vmem>>, vector<288x32xf32>
    %cst_50 = arith.constant dense<0.000000e+00> : vector<36x32xf32>
    %88 = tpu.matmul %86, %87, %cst_50 {dimension_numbers = #tpu.dot_dimension_numbers<[1], [0], [0], [1], [0, 0, 1, 1], [], []>} : vector<36x288xf32>, vector<288x32xf32>, vector<36x32xf32> -> vector<36x32xf32>
    %89 = vector.broadcast %48 : vector<1x32xf32> to vector<36x32xf32>
    %90 = arith.addf %88, %89 : vector<36x32xf32>
    %c8_51 = arith.constant 8 : index
    %c0_52 = arith.constant 0 : index
    %91 = vector.load %arg6[%c8_51, %c0_52] : memref<52x32xf32, #tpu.memory_space<vmem>>, vector<36x32xf32>
    tpu.vector_store %arg6[%c8_51, %c0_52], %90 {strides = array<i32>} : memref<52x32xf32, #tpu.memory_space<vmem>>, vector<36x32xf32>,
    %c1_53 = arith.constant 1 : index
    %c0_54 = arith.constant 0 : index
    %92 = vector.load %arg6[%c1_53, %c0_54] : memref<52x32xf32, #tpu.memory_space<vmem>>, vector<36x32xf32>
    %93 = arith.mulf %92, %37 : vector<36x32xf32>
    %c2_55 = arith.constant 2 : index
    %c0_56 = arith.constant 0 : index
    %94 = vector.load %arg6[%c2_55, %c0_56] : memref<52x32xf32, #tpu.memory_space<vmem>>, vector<36x32xf32>
    %c3_57 = arith.constant 3 : index
    %c0_58 = arith.constant 0 : index
    %95 = vector.load %arg6[%c3_57, %c0_58] : memref<52x32xf32, #tpu.memory_space<vmem>>, vector<36x32xf32>
    %96 = arith.mulf %95, %38 : vector<36x32xf32>
    %c7_59 = arith.constant 7 : index
    %c0_60 = arith.constant 0 : index
    %97 = vector.load %arg6[%c7_59, %c0_60] : memref<52x32xf32, #tpu.memory_space<vmem>>, vector<36x32xf32>
    %98 = arith.mulf %97, %37 : vector<36x32xf32>
    %c8_61 = arith.constant 8 : index
    %c0_62 = arith.constant 0 : index
    %99 = vector.load %arg6[%c8_61, %c0_62] : memref<52x32xf32, #tpu.memory_space<vmem>>, vector<36x32xf32>
    %c9_63 = arith.constant 9 : index
    %c0_64 = arith.constant 0 : index
    %100 = vector.load %arg6[%c9_63, %c0_64] : memref<52x32xf32, #tpu.memory_space<vmem>>, vector<36x32xf32>
    %101 = arith.mulf %100, %38 : vector<36x32xf32>
    %c13_65 = arith.constant 13 : index
    %c0_66 = arith.constant 0 : index
    %102 = vector.load %arg6[%c13_65, %c0_66] : memref<52x32xf32, #tpu.memory_space<vmem>>, vector<36x32xf32>
    %103 = arith.mulf %102, %37 : vector<36x32xf32>
    %c14_67 = arith.constant 14 : index
    %c0_68 = arith.constant 0 : index
    %104 = vector.load %arg6[%c14_67, %c0_68] : memref<52x32xf32, #tpu.memory_space<vmem>>, vector<36x32xf32>
    %c15_69 = arith.constant 15 : index
    %c0_70 = arith.constant 0 : index
    %105 = vector.load %arg6[%c15_69, %c0_70] : memref<52x32xf32, #tpu.memory_space<vmem>>, vector<36x32xf32>
    %106 = arith.mulf %105, %38 : vector<36x32xf32>
    %107 = tpu.concatenate %93, %94, %96, %98, %99, %101, %103, %104, %106 in 1 : vector<36x32xf32>, vector<36x32xf32>, vector<36x32xf32>, vector<36x32xf32>, vector<36x32xf32>, vector<36x32xf32>, vector<36x32xf32>, vector<36x32xf32>, vector<36x32xf32> -> vector<36x288xf32>
    %c0_71 = arith.constant 0 : index
    %c0_72 = arith.constant 0 : index
    %108 = vector.load %arg2[%c0_71, %c0_72] : memref<288x32xf32, #tpu.memory_space<vmem>>, vector<288x32xf32>
    %cst_73 = arith.constant dense<0.000000e+00> : vector<36x32xf32>
    %109 = tpu.matmul %107, %108, %cst_73 {dimension_numbers = #tpu.dot_dimension_numbers<[1], [0], [0], [1], [0, 0, 1, 1], [], []>} : vector<36x288xf32>, vector<288x32xf32>, vector<36x32xf32> -> vector<36x32xf32>
    %110 = vector.broadcast %47 : vector<1x32xf32> to vector<36x32xf32>
    %111 = arith.addf %109, %110 : vector<36x32xf32>
    %112 = arith.addf %90, %111 : vector<36x32xf32>
    %113 = arith.addf %112, %46 : vector<36x32xf32>
    %c0_74 = arith.constant 0 : index
    %c0_75 = arith.constant 0 : index
    %114 = vector.load %arg5[%c0_74, %c0_75] : memref<36x32xf32, #tpu.memory_space<vmem>>, vector<36x32xf32>
    tpu.vector_store %arg5[%c0_74, %c0_75], %113 {strides = array<i32>} : memref<36x32xf32, #tpu.memory_space<vmem>>, vector<36x32xf32>,
    return
  }
}

</mosaic_0001>

<bundles_post_ra>
// kernel: _fused_forward.1
= control target key start
LH: loop header
LB: loop body
LE: loop exit
PB: predicated region body
PF: predicated region fallthrough
CT: control target
= control target key end

     0   :  { %vm183_vm0 = vcmask 1040384   ;;  %v2192_v0 = vmov 0.0   ;;  %vm2193_vm1 = vmmov 0   ;;  %vm146_vm2 = vcmask 261120   ;;  %s2195_s24 = smov 96   ;;  %s2196_s25 = smov 32   ;;  %s3101_s1 = inlined_call_operand.vmem [shape: f32[9,32], index: 1, kind: input, shape index: {}]   ;;  %s3102_s0 = inlined_call_operand.vmem [shape: f32[36,9], index: 0, kind: input, shape index: {}]   ;;  %s3103_s2 = inlined_call_operand.vmem [shape: f32[288,32], index: 2, kind: input, shape index: {}]   ;;  %s3104_s4 = inlined_call_operand.vmem [shape: f32[3,32], index: 4, kind: input, shape index: {}]   ;;  %s3105_s3 = inlined_call_operand.vmem [shape: f32[288,32], index: 3, kind: input, shape index: {}]   ;;  %s3106_s5 = inlined_call_operand.vmem [shape: f32[36,32], index: 5, kind: output, shape index: {}]  }
   0x1   :  { %1872 = vmatprep.subr.mxu0 %v2192_v0  ;;  %v161_v1 = vld [vmem:[%s3101_s1 + $0x8] sm:$0x1]  ;;  %v160_v2 = vld [vmem:[%s3101_s1] sm:$0xff]  ;;  %1876 = vmatprep.mubr.msk.f32.mxu0 %vm2193_vm1, %v2192_v0  ;;  %vm167_vm3 = vcmask 72704   ;;  %148 = vst.msk [vmem:[#allocation2 + $0x8] sm:$0xff] %vm146_vm2, %v2192_v0  ;;  %147 = vst.msk [vmem:[#allocation2] sm:$0xff] %vm146_vm2, %v2192_v0  ;;  %v20_v33 = vlaneseq }
   0x2   :  { %1873 = vmatpush3.msk.msra.mxu0 %vm183_vm0, %v161_v1  ;;  %v155_v3 = vld [vmem:[%s3102_s0] sm:$0xff]  ;;  %149 = vst.msk [vmem:[#allocation2 + $0x10] sm:$0xff] %vm146_vm2, %v2192_v0  ;;  %150 = vst.msk [vmem:[#allocation2 + $0x18] sm:$0xff] %vm146_vm2, %v2192_v0  ;;  %v156_v4 = vld [vmem:[%s3102_s0 + $0x8] sm:$0xff]  ;;  %vm153_vm4 = vcmask 257024   ;;  %v2194_v52 = vmov 1.0  }
   0x3   :  { %151 = vst.msk [vmem:[#allocation2 + $0x20] sm:$0xff] %vm146_vm2, %v2192_v0  ;;  %152 = vst.msk [vmem:[#allocation2 + $0x28] sm:$0xff] %vm146_vm2, %v2192_v0  ;;  %1874 = vmatprep.subr.mxu0 %v2192_v0  ;;  %v157_v5 = vld [vmem:[%s3102_s0 + $0x10] sm:$0xff]  ;;  %v158_v6 = vld [vmem:[%s3102_s0 + $0x18] sm:$0xff]  ;;  %v2366_v36 = vshrl.u32 %v20_v33, 7  ;;  %s2197_s26 = smov 64  }
   0x4   :  { %1875 = vmatpush3.msra.mxu0 %v160_v2  ;;  %v159_v7 = vld [vmem:[%s3102_s0 + $0x20] sm:$0xf]  ;;  %v540_v8 = vld [vmem:[%s3103_s2 + $0x118] sm:$0xff]  ;;  %v539_v9 = vld [vmem:[%s3103_s2 + $0x110] sm:$0xff]  ;;  %154 = vst.msk [vmem:[#allocation2 + $0x30] sm:$0xf] %vm153_vm4, %v2192_v0 }
   0x5   :  { %1877 = vmatmul.mubr.msk.f32.vlgmr.msra.gmra.mxu0 %vm167_vm3, %v155_v3  ;;  %1891 = vmatprep.subr.mxu0 %v2192_v0  ;;  %v538_v10 = vld [vmem:[%s3103_s2 + $0x108] sm:$0xff]  ;;  %v537_v11 = vld [vmem:[%s3103_s2 + $0x100] sm:$0xff]  ;;  %v536_v12 = vld [vmem:[%s3103_s2 + $0xf8] sm:$0xff]  ;;  %vm26_vm5 = vcmp.eq.s32.totalorder %v2366_v36, 0  ;;  %vm36_vm6 = vcmp.eq.s32.totalorder %v2366_v36, 6  ;;  %v22_v44 = vadd.s32 8, %v2366_v36 }
   0x6   :  { %1879 = vmatprep.mubr.msk.f32.mxu0 %vm2193_vm1, %v2192_v0  ;;  %1892 = vmatpush3.msra.mxu0 %v540_v8  ;;  %v520_v13 = vld [vmem:[%s3103_s2 + $0x78] sm:$0xff]  ;;  %v535_v14 = vld [vmem:[%s3103_s2 + $0xf0] sm:$0xff]  ;;  %v534_v16 = vld [vmem:[%s3103_s2 + $0xe8] sm:$0xff]  ;;  %vm31_vm9 = vcmp.eq.s32.totalorder %v2366_v36, 5  ;;  %v2415_v58 = vadd.s32 16, %v2366_v36 }
   0x7   :  { %1893 = vmatprep.subr.mxu0 %v2192_v0  ;;  %1704 = vmatprep.subr.mxu1 %v536_v12  ;;  %v519_v15 = vld [vmem:[%s3103_s2 + $0x70] sm:$0xff]  ;;  %v518_v17 = vld [vmem:[%s3103_s2 + $0x68] sm:$0xff]  ;;  %v533_v18 = vld [vmem:[%s3103_s2 + $0xe0] sm:$0xff]  ;;  %vm57_vm8 = vcmp.eq.s32.totalorder %v22_v44, 12  ;;  %v2431_v3 = vsel %vm31_vm9, 0.0, %v2194_v52  ;;  %vm47_vm10 = vcmp.eq.s32.totalorder %v22_v44, 11 }
   0x8   :  { %1894 = vmatpush3.msra.mxu0 %v539_v9  ;;  %1705 = vmatpush3.msra.mxu1 %v520_v13  ;;  %v517_v19 = vld [vmem:[%s3103_s2 + $0x60] sm:$0xff]  ;;  %v532_v20 = vld [vmem:[%s3103_s2 + $0xd8] sm:$0xff]  ;;  %v531_v22 = vld [vmem:[%s3103_s2 + $0xd0] sm:$0xff]  ;;  %v2428_v63 = vsel %vm57_vm8, 0.0, %v2194_v52  ;;  %vm68_vm11 = vcmp.eq.s32.totalorder %v2415_v58, 17  ;;  %vm88_vm12 = vcmp.eq.s32.totalorder %v2415_v58, 23 }
   0x9   :  { %1880 = vmatmul.mubr.msk.f32.gmra.mxu0 %vm167_vm3, %v156_v4  ;;  %1895 = vmatprep.subr.mxu0 %v2192_v0  ;;  %v516_v21 = vld [vmem:[%s3103_s2 + $0x58] sm:$0xff]  ;;  %v515_v23 = vld [vmem:[%s3103_s2 + $0x50] sm:$0xff]  ;;  %v530_v24 = vld [vmem:[%s3103_s2 + $0xc8] sm:$0xff]  ;;  %vm78_vm13 = vcmp.eq.s32.totalorder %v2415_v58, 18  ;;  %vm484_vm8 = vcmask 785408  }
   0xa   :  { %1882 = vmatprep.mubr.msk.f32.mxu0 %vm2193_vm1, %v2192_v0  ;;  %1896 = vmatpush3.msra.mxu0 %v538_v10  ;;  %v514_v25 = vld [vmem:[%s3103_s2 + $0x48] sm:$0xff]  ;;  %v529_v26 = vld [vmem:[%s3103_s2 + $0xc0] sm:$0xff]  ;;  %v528_v28 = vld [vmem:[%s3103_s2 + $0xb8] sm:$0xff] }
   0xb   :  { %1897 = vmatprep.subr.mxu0 %v2192_v0  ;;  %1706 = vmatprep.subr.mxu1 %v535_v14  ;;  %v513_v27 = vld [vmem:[%s3103_s2 + $0x40] sm:$0xff]  ;;  %v512_v29 = vld [vmem:[%s3103_s2 + $0x38] sm:$0xff]  ;;  %v527_v30 = vld [vmem:[%s3103_s2 + $0xb0] sm:$0xff] }
   0xc   :  { %1898 = vmatpush3.msra.mxu0 %v537_v11  ;;  %1707 = vmatpush3.msra.mxu1 %v519_v15  ;;  %v511_v31 = vld [vmem:[%s3103_s2 + $0x30] sm:$0xff]  ;;  %v526_v32 = vld [vmem:[%s3103_s2 + $0xa8] sm:$0xff]  ;;  %v2364_v34 = vld [vmem:[%s3104_s4] ss:$0 sm:$0xff] }
   0xd   :  { %1883 = vmatmul.mubr.msk.f32.gmra.mxu0 %vm167_vm3, %v157_v5  ;;  %1708 = vmatprep.subr.mxu1 %v534_v16  ;;  %v510_v40 = vld [vmem:[%s3103_s2 + $0x28] sm:$0xff]  ;;  %v525_v41 = vld [vmem:[%s3103_s2 + $0xa0] sm:$0xff]  ;;  %v524_v46 = vld [vmem:[%s3103_s2 + $0x98] sm:$0xff] }
   0xe   :  { %1885 = vmatprep.mubr.msk.f32.mxu0 %vm2193_vm1, %v2192_v0  ;;  %1709 = vmatpush3.msra.mxu1 %v518_v17  ;;  %v509_v45 = vld [vmem:[%s3103_s2 + $0x20] sm:$0xff]  ;;  %vm41_vm7 = vmor %vm26_vm5, %vm36_vm6  ;;  %v508_v48 = vld [vmem:[%s3103_s2 + $0x18] sm:$0xff] }
   0xf   :  { %1710 = vmatprep.subr.mxu1 %v533_v18  ;;  %v523_v49 = vld [vmem:[%s3103_s2 + $0x90] sm:$0xff]  ;;  %v2403_v53 = vsel %vm41_vm7, 0.0, %v2194_v52  ;;  %v522_v56 = vld [vmem:[%s3103_s2 + $0x88] sm:$0xff]  ;;  %v521_v60 = vld [vmem:[%s3103_s2 + $0x80] sm:$0xff]  ;;  %vm478_vm7 = vcmask 523264  }
  0x10   :  { %1711 = vmatpush3.msra.mxu1 %v517_v19  ;;  %v507_v55 = vld [vmem:[%s3103_s2 + $0x10] sm:$0xff]  ;;  %v506_v59 = vld [vmem:[%s3103_s2 + $0x8] sm:$0xff]  ;;  %v505_v14 = vld [vmem:[%s3103_s2] sm:$0xff]  ;;  %v2456_v19 = vsel %vm47_vm10, 0.0, %v2194_v52 }
  0x11   :  { %1886 = vmatmul.mubr.msk.f32.gmra.mxu0 %vm167_vm3, %v158_v6  ;;  %1712 = vmatprep.subr.mxu1 %v532_v20  ;;  %vm93_vm14 = vmor %vm68_vm11, %vm88_vm12 }
  0x12   :  { %1888 = vmatprep.mubr.msk.f32.mxu0 %vm2193_vm1, %v2192_v0  ;;  %1713 = vmatpush3.msra.mxu1 %v516_v21  ;;  %v2480_v33 = vsel %vm93_vm14, 0.0, %v2194_v52 }
  0x13   :  { %1714 = vmatprep.subr.mxu1 %v531_v22 }
  0x14   :  { %1715 = vmatpush3.msra.mxu1 %v515_v23  ;;  %v24_v23 = vadd.s32 24, %v2366_v36 }
  0x15   :  { %1889 = vmatmul.mubr.msk.f32.gmra.mxu0 %vm167_vm3, %v159_v7  ;;  %1716 = vmatprep.subr.mxu1 %v530_v24 }
  0x16   :  { %1899 = vmatprep.mubr.msk.f32.mxu0 %vm2193_vm1, %v2192_v0  ;;  %1717 = vmatpush3.msra.mxu1 %v514_v25  ;;  %vm109_vm15 = vcmp.eq.s32.totalorder %v24_v23, 29  ;;  %vm99_vm0 = vcmp.eq.s32.totalorder %v24_v23, 24  ;;  %vm119_vm3 = vcmp.eq.s32.totalorder %v24_v23, 30 }
  0x17   :  { %1718 = vmatprep.subr.mxu1 %v529_v26  ;;  %vm124_vm5 = vmor %vm99_vm0, %vm119_vm3 }
  0x18   :  { %1719 = vmatpush3.msra.mxu1 %v513_v27 }
  0x19   :  { %1720 = vmatprep.subr.mxu1 %v528_v28 }
  0x1a   :  { %1721 = vmatpush3.msra.mxu1 %v512_v29 }
  0x1b   :  { %1722 = vmatprep.subr.mxu1 %v527_v30 }
  0x1c   :  { %1723 = vmatpush3.msra.mxu1 %v511_v31 }
  0x1d   :  { %1724 = vmatprep.subr.mxu1 %v526_v32 }
  0x1e   :  { %1725 = vmatpush3.msra.mxu1 %v510_v40 }
  0x1f   :  { %1726 = vmatprep.subr.mxu1 %v525_v41 }
  0x20   :  { %1727 = vmatpush3.msra.mxu1 %v509_v45 }
  0x21   :  { %1728 = vmatprep.subr.mxu1 %v524_v46 }
  0x22   :  { %1729 = vmatpush3.msra.mxu1 %v508_v48  ;;  %v2497_v48 = vsel %vm109_vm15, 0.0, %v2194_v52 }
  0x23   :  { %1730 = vmatprep.subr.mxu1 %v523_v49 }
  0x24   :  { %1731 = vmatpush3.msra.mxu1 %v507_v55  ;;  %v25_v55 = vadd.s32 32, %v2366_v36 }
  0x25   :  { %1732 = vmatprep.subr.mxu1 %v522_v56 }
  0x26   :  { %1733 = vmatpush3.msra.mxu1 %v506_v59  ;;  %vm130_vm6 = vcmp.eq.s32.totalorder %v25_v55, 35 }
  0x27   :  { %1734 = vmatprep.subr.mxu1 %v521_v60 }
  0x28   :  { %1735 = vmatpush3.msra.mxu1 %v505_v14 }
  0x29   :  { %1914 = vmatprep.subr.mxu1 %v2192_v0 }
  0xc5   :  { %v253_v35 = vpop.f32.mrf.mxu0 }
  0xc6   :  { %v2369_v37 = vadd.f32 %v2364_v34, %v253_v35  ;;  %v2485_v35 = vsel %vm78_vm13, 0.0, %v2194_v52 }
  0xc7   :  { %v1878_v38 = vpop.f32.mrf.mxu0 }
  0xc8   :  { %279 = vst.msk [vmem:[#allocation2 + $0x8] sm:$0xff] %vm146_vm2, %v2369_v37 }
  0xc9   :  { %v258_v39 = vpop.f32.mrf.mxu0 }
  0xca   :  { %v2382_v42 = vadd.f32 %v2364_v34, %v258_v39 }
  0xcb   :  { %v1881_v43 = vpop.f32.mrf.mxu0 }
  0xcc   :  { %280 = vst.msk [vmem:[#allocation2 + $0x10] sm:$0xff] %vm146_vm2, %v2382_v42 }
  0xcd   :  { %v263_v47 = vpop.f32.mrf.mxu0 }
  0xce   :  { %v2400_v50 = vadd.f32 %v2364_v34, %v263_v47 }
  0xcf   :  { %v1884_v51 = vpop.f32.mrf.mxu0  ;;  %v309_v54 = vld [vmem:[#allocation2 + $0x7] sm:$0xff] }
  0xd0   :  { %281 = vst.msk [vmem:[#allocation2 + $0x18] sm:$0xff] %vm146_vm2, %v2400_v50  ;;  %v314_v62 = vmul.f32 %v309_v54, %v2403_v53  ;;  %v294_v11 = vld [vmem:[#allocation2 + $0x2] sm:$0xff] }
  0xd1   :  { %v268_v57 = vpop.f32.mrf.mxu0  ;;  %v299_v13 = vld [vmem:[#allocation2 + $0x3] sm:$0xff] }
  0xd2   :  { %v2424_v61 = vadd.f32 %v2364_v34, %v268_v57  ;;  %v304_v26 = vmul.f32 %v299_v13, %v2431_v3  ;;  %v2522_v13 = vsel %vm130_vm6, 0.0, %v2194_v52 }
  0xd3   :  { %v1887_v1 = vpop.f32.mrf.mxu0  ;;  %v341_v2 = vld [vmem:[#allocation2 + $0xe] sm:$0xff] }
  0xd4   :  { %v310_v4 = vld [vmem:[#allocation2 + $0xf] sm:$0xff]  ;;  %282 = vst.msk [vmem:[#allocation2 + $0x20] sm:$0xff] %vm146_vm2, %v2424_v61  ;;  %v1966_v6 = vpack.i.bf16 %v314_v62, %v341_v2  ;;  %v2513_v1 = vsel %vm124_vm5, 0.0, %v2194_v52 }
  0xd5   :  { %v2433_v5 = vld [vmem:[#allocation2 + $0x9] sm:$0xff]  ;;  %v348_v7 = vmul.f32 %v310_v4, %v2431_v3  ;;  %v273_v10 = vpop.f32.mrf.mxu0  ;;  %v315_v12 = vmul.f32 %v310_v4, %v2428_v63 }
  0xd6   :  { %v326_v8 = vmul.f32 %v2433_v5, %v2431_v3  ;;  %v331_v9 = vld [vmem:[#allocation2 + $0xd] sm:$0xff]  ;;  %v2447_v15 = vadd.f32 %v2364_v34, %v273_v10  ;;  %1967 = vrot.lane.b32.xlu1 %v1966_v6, %s2195_s24 }
  0xd7   :  { %1900 = vmatmul.mubr.msk.f32.vlgmr.msra.gmra.mxu0 %vm146_vm2, %v348_v7  ;;  %v336_v17 = vmul.f32 %v331_v9, %v2403_v53  ;;  %v342_v18 = vld [vmem:[#allocation2 + $0x16] sm:$0xff]  ;;  %v1890_v21 = vpop.f32.mrf.mxu0  ;;  %v300_v29 = vld [vmem:[#allocation2 + $0xb] sm:$0xff] }
  0xd8   :  { %v1971_v16 = vpack.i.bf16 %v294_v11, %v326_v8  ;;  %1902 = vmatprep.mubr.msk.f32.mxu0 %vm2193_vm1, %v2192_v0  ;;  %v311_v20 = vld [vmem:[#allocation2 + $0x17] sm:$0xff]  ;;  %283 = vst.msk [vmem:[#allocation2 + $0x28] sm:$0xf] %vm153_vm4, %v2447_v15  ;;  %v1981_v24 = vpack.i.bf16 %v315_v12, %v342_v18  ;;  %v295_v31 = vld [vmem:[#allocation2 + $0xa] sm:$0xff]  ;;  %v305_v43 = vmul.f32 %v300_v29, %v2456_v19 }
  0xd9   :  { %v2458_v22 = vld [vmem:[#allocation2 + $0x11] sm:$0xff]  ;;  %v349_v25 = vmul.f32 %v311_v20, %v2456_v19  ;;  %v1976_v30 = vpack.i.bf16 %v304_v26, %v336_v17  ;;  %v316_v58 = vmul.f32 %v311_v20, %v2485_v35  ;;  %v335_v20 = vld [vmem:[#allocation2 + $0x2d] sm:$0xf] }
  0xda   :  { %1972 = vrot.lane.b32.xlu0 %v1971_v16, %s2196_s25  ;;  %v327_v27 = vmul.f32 %v2458_v22, %v2456_v19  ;;  %v332_v28 = vld [vmem:[#allocation2 + $0x15] sm:$0xff]  ;;  %1982 = vrot.lane.b32.xlu1 %v1981_v24, %s2195_s24  ;;  %v345_v29 = vld [vmem:[#allocation2 + $0x2e] sm:$0xf] }
  0xdb   :  { %1903 = vmatmul.mubr.msk.f32.gmra.mxu0 %vm146_vm2, %v349_v25  ;;  %v337_v32 = vmul.f32 %v332_v28, %v2428_v63  ;;  %v312_v34 = vld [vmem:[#allocation2 + $0x1f] sm:$0xff]  ;;  %v301_v38 = vld [vmem:[#allocation2 + $0x13] sm:$0xff]  ;;  %v347_v25 = vld [vmem:[#allocation2 + $0x2f] sm:$0xf] }
  0xdc   :  { %1905 = vmatprep.mubr.msk.f32.mxu0 %vm2193_vm1, %v2192_v0  ;;  %v333_v39 = vld [vmem:[#allocation2 + $0x1d] sm:$0xff]  ;;  %v1986_v40 = vpack.i.bf16 %v295_v31, %v327_v27  ;;  %v350_v41 = vmul.f32 %v312_v34, %v2480_v33  ;;  %v306_v46 = vmul.f32 %v301_v38, %v2480_v33  ;;  %v296_v6 = vld [vmem:[#allocation2 + $0x12] sm:$0xff]  ;;  %v317_v11 = vmul.f32 %v312_v34, %v2513_v1 }
  0xdd   :  { %v338_v44 = vmul.f32 %v333_v39, %v2485_v35  ;;  %v1991_v45 = vpack.i.bf16 %v305_v43, %v337_v32  ;;  %v343_v47 = vld [vmem:[#allocation2 + $0x1e] sm:$0xff]  ;;  %v352_v26 = vmul.f32 %v347_v25, %v2522_v13 }
  0xde   :  { %1977 = vrot.lane.b32.xlu0 %v1976_v30, %s2197_s26  ;;  %1987 = vrot.lane.b32.xlu1 %v1986_v40, %s2196_s25  ;;  %v2499_v54 = vld [vmem:[#allocation2 + $0x19] sm:$0xff]  ;;  %v1996_v60 = vpack.i.bf16 %v316_v58, %v343_v47  ;;  %v303_v9 = vld [vmem:[#allocation2 + $0x23] sm:$0xf]  ;;  %v290_v47 = vmul.f32 %v2433_v5, %v2428_v63 }
  0xdf   :  { %1906 = vmatmul.mubr.msk.f32.gmra.mxu0 %vm146_vm2, %v350_v41  ;;  %v346_v49 = vld [vmem:[#allocation2 + $0x27] sm:$0xff]  ;;  %v2006_v56 = vpack.i.bf16 %v306_v46, %v338_v44  ;;  %v328_v36 = vmul.f32 %v2499_v54, %v2480_v33  ;;  %v297_v62 = vld [vmem:[#allocation2 + $0x1a] sm:$0xff]  ;;  %v308_v18 = vmul.f32 %v303_v9, %v2522_v13  ;;  %v298_v24 = vld [vmem:[#allocation2 + $0x22] sm:$0xf] }
  0xe0   :  { %1908 = vmatprep.mubr.msk.f32.mxu0 %vm2193_vm1, %v2192_v0  ;;  %v324_v51 = vld [vmem:[#allocation2 + $0x21] sm:$0xff]  ;;  %v351_v57 = vmul.f32 %v346_v49, %v2497_v48  ;;  %v325_v14 = vld [vmem:[#allocation2 + $0x29] sm:$0xf] }
  0xe1   :  { %v329_v59 = vmul.f32 %v324_v51, %v2497_v48  ;;  %v334_v2 = vld [vmem:[#allocation2 + $0x25] sm:$0xff]  ;;  %v302_v8 = vld [vmem:[#allocation2 + $0x1b] sm:$0xff]  ;;  %v2001_v10 = vpack.i.bf16 %v296_v6, %v328_v36  ;;  %v330_v23 = vmul.f32 %v325_v14, %v2522_v13  ;;  %v2021_v52 = vpack.i.bf16 %v308_v18, %v335_v20  ;;  %v320_v6 = vld [vmem:[#allocation2 + $0x10] sm:$0xff] }
  0xe2   :  { %1992 = vrot.lane.b32.xlu0 %v1991_v45, %s2197_s26  ;;  %2007 = vrot.lane.b32.xlu1 %v2006_v56, %s2197_s26  ;;  %v344_v7 = vld [vmem:[#allocation2 + $0x26] sm:$0xff]  ;;  %v339_v12 = vmul.f32 %v334_v2, %v2513_v1  ;;  %v307_v17 = vmul.f32 %v302_v8, %v2497_v48 }
  0xe3   :  { %1909 = vmatmul.mubr.msk.f32.gmra.mxu0 %vm146_vm2, %v351_v57  ;;  %v2011_v4 = vpack.i.bf16 %v297_v62, %v329_v59  ;;  %v2016_v16 = vpack.i.bf16 %v317_v11, %v344_v7  ;;  %v2031_v27 = vpack.i.bf16 %v298_v24, %v330_v23  ;;  %v313_v28 = vld [vmem:[#allocation2 + $0x27] sm:$0xf] }
  0xe4   :  { %1911 = vmatprep.mubr.msk.f32.mxu0 %vm2193_vm1, %v2192_v0  ;;  %v2026_v21 = vpack.i.bf16 %v307_v17, %v339_v12  ;;  %v2036_v30 = vpack.i.bf16 %v313_v28, %v345_v29  ;;  %v284_v34 = vld [vmem:[#allocation2 + $0x1] sm:$0xff] }
  0xe5   :  { %v289_v43 = vmul.f32 %v284_v34, %v2403_v53  ;;  %v319_v46 = vld [vmem:[#allocation2 + $0x8] sm:$0xff] }
  0xe6   :  { %1997 = vrot.lane.b32.xlu0 %v1996_v60, %s2195_s24  ;;  %2012 = vrot.lane.b32.xlu1 %v2011_v4, %s2196_s25 }
  0xe7   :  { %1912 = vmatmul.mubr.msk.f32.gmra.mxu0 %vm146_vm2, %v352_v26 }
  0xea   :  { %2002 = vrot.lane.b32.xlu0 %v2001_v10, %s2196_s25  ;;  %2017 = vrot.lane.b32.xlu1 %v2016_v16, %s2195_s24 }
  0xee   :  { %2027 = vrot.lane.b32.xlu0 %v2026_v21, %s2197_s26  ;;  %2022 = vrot.lane.b32.xlu1 %v2021_v52, %s2197_s26  ;;  %v291_v52 = vmul.f32 %v2458_v22, %v2485_v35  ;;  %v292_v22 = vmul.f32 %v2499_v54, %v2513_v1 }
  0xf2   :  { %2032 = vrot.lane.b32.xlu0 %v2031_v27, %s2196_s25 }
  0xf6   :  { %2037 = vrot.lane.b32.xlu0 %v2036_v30, %s2195_s24  ;;  %v321_v30 = vld [vmem:[#allocation2 + $0x18] sm:$0xff] }
 0x148   :  { %v1968_v31 = vpop.permute.xlu1 %1967 }
 0x149   :  { %v1970_v49 = vunpack.i.h.bf16 %v1968_v31  ;;  %v1969_v51 = vunpack.i.l.bf16 %v1968_v31 }
 0x14c   :  { %v1973_v32 = vpop.permute.xlu0 %1972  ;;  %v1983_v40 = vpop.permute.xlu1 %1982 }
 0x14d   :  { %v1975_v38 = vunpack.i.h.bf16 %v1973_v32  ;;  %v1974_v39 = vunpack.i.l.bf16 %v1973_v32  ;;  %v1985_v10 = vunpack.i.h.bf16 %v1983_v40  ;;  %v1984_v11 = vunpack.i.l.bf16 %v1983_v40 }
 0x14f   :  { %v490_v56 = vsel %vm146_vm2, %v319_v46, %v1974_v39  ;;  %v473_v57 = vsel %vm146_vm2, %v289_v43, %v1975_v38 }
 0x150   :  { %v1978_v41 = vpop.permute.xlu0 %1977  ;;  %v1988_v55 = vpop.permute.xlu1 %1987 }
 0x151   :  { %v1980_v44 = vunpack.i.h.bf16 %v1978_v41  ;;  %v1979_v45 = vunpack.i.l.bf16 %v1978_v41  ;;  %v1990_v58 = vunpack.i.h.bf16 %v1988_v55  ;;  %v1989_v59 = vunpack.i.l.bf16 %v1988_v55 }
 0x153   :  { %v495_v60 = vsel %vm478_vm7, %v490_v56, %v1979_v45  ;;  %v479_v36 = vsel %vm478_vm7, %v473_v57, %v1980_v44  ;;  %v491_v8 = vsel %vm146_vm2, %v320_v6, %v1989_v59  ;;  %v474_v9 = vsel %vm146_vm2, %v290_v47, %v1990_v58  ;;  %v323_v6 = vld [vmem:[#allocation2 + $0x28] sm:$0xf] }
 0x154   :  { %v1993_v62 = vpop.permute.xlu0 %1992  ;;  %v500_v2 = vsel %vm484_vm8, %v495_v60, %v1969_v51  ;;  %v485_v4 = vsel %vm484_vm8, %v479_v36, %v1970_v49  ;;  %v2008_v12 = vpop.permute.xlu1 %2007  ;;  %v322_v49 = vld [vmem:[#allocation2 + $0x20] sm:$0xff] }
 0x155   :  { %v1995_v5 = vunpack.i.h.bf16 %v1993_v62  ;;  %v1994_v7 = vunpack.i.l.bf16 %v1993_v62  ;;  %624 = vmatprep.mubr.f32.mxu1 %v500_v2  ;;  %v2010_v26 = vunpack.i.h.bf16 %v2008_v12  ;;  %v2009_v27 = vunpack.i.l.bf16 %v2008_v12 }
 0x156   :  { %625 = vmatmul.mubr.f32.vlgmr.msra.gmra.mxu1 %v485_v4 }
 0x157   :  { %v496_v14 = vsel %vm478_vm7, %v491_v8, %v1994_v7  ;;  %v480_v16 = vsel %vm478_vm7, %v474_v9, %v1995_v5  ;;  %v288_v5 = vld [vmem:[#allocation2 + $0x21] sm:$0xf] }
 0x158   :  { %v1998_v17 = vpop.permute.xlu0 %1997  ;;  %v501_v18 = vsel %vm484_vm8, %v496_v14, %v1984_v11  ;;  %v486_v20 = vsel %vm484_vm8, %v480_v16, %v1985_v10  ;;  %v2013_v21 = vpop.permute.xlu1 %2012 }
 0x159   :  { %629 = vmatprep.mubr.f32.mxu1 %v501_v18  ;;  %v2015_v28 = vunpack.i.h.bf16 %v2013_v21  ;;  %v2014_v29 = vunpack.i.l.bf16 %v2013_v21  ;;  %v2000_v31 = vunpack.i.h.bf16 %v1998_v17  ;;  %v1999_v32 = vunpack.i.l.bf16 %v1998_v17 }
 0x15a   :  { %630 = vmatmul.mubr.f32.gmra.mxu1 %v486_v20 }
 0x15b   :  { %v493_v55 = vsel %vm146_vm2, %v322_v49, %v2014_v29  ;;  %v476_v56 = vsel %vm146_vm2, %v292_v22, %v2015_v28  ;;  %v999_v29 = vld [vmem:[%s3105_s3 + $0x118] sm:$0xff]  ;;  %v993_v22 = vld [vmem:[%s3105_s3 + $0xe8] sm:$0xff] }
 0x15c   :  { %v2003_v23 = vpop.permute.xlu0 %2002  ;;  %v2018_v34 = vpop.permute.xlu1 %2017  ;;  %1915 = vmatpush3.msra.mxu1 %v999_v29  ;;  %v975_v49 = vld [vmem:[%s3105_s3 + $0x58] sm:$0xff] }
 0x15d   :  { %v2005_v24 = vunpack.i.h.bf16 %v2003_v23  ;;  %v2004_v25 = vunpack.i.l.bf16 %v2003_v23  ;;  %v2019_v51 = vunpack.i.l.bf16 %v2018_v34  ;;  %v2020_v59 = vunpack.i.h.bf16 %v2018_v34  ;;  %1916 = vmatprep.subr.mxu1 %v2192_v0 }
 0x15f   :  { %v492_v38 = vsel %vm146_vm2, %v321_v30, %v2004_v25  ;;  %v475_v39 = vsel %vm146_vm2, %v291_v52, %v2005_v24  ;;  %v998_v30 = vld [vmem:[%s3105_s3 + $0x110] sm:$0xff] }
 0x160   :  { %v2028_v40 = vpop.permute.xlu0 %2027  ;;  %v497_v41 = vsel %vm478_vm7, %v492_v38, %v2009_v27  ;;  %v481_v43 = vsel %vm478_vm7, %v475_v39, %v2010_v26  ;;  %v2023_v36 = vpop.permute.xlu1 %2022  ;;  %1917 = vmatpush3.msra.mxu1 %v998_v30  ;;  %v995_v39 = vld [vmem:[%s3105_s3 + $0xf8] sm:$0xff] }
 0x161   :  { %v2030_v44 = vunpack.i.h.bf16 %v2028_v40  ;;  %v2029_v45 = vunpack.i.l.bf16 %v2028_v40  ;;  %v502_v46 = vsel %vm484_vm8, %v497_v41, %v1999_v32  ;;  %v487_v47 = vsel %vm484_vm8, %v481_v43, %v2000_v31  ;;  %1918 = vmatprep.subr.mxu1 %v2192_v0  ;;  %v997_v31 = vld [vmem:[%s3105_s3 + $0x108] sm:$0xff]  ;;  %v996_v32 = vld [vmem:[%s3105_s3 + $0x100] sm:$0xff]  ;;  %v979_v40 = vld [vmem:[%s3105_s3 + $0x78] sm:$0xff]  ;;  %1760 = vmatprep.subr.mxu0 %v995_v39 }
 0x162   :  { %634 = vmatprep.mubr.f32.mxu1 %v502_v46  ;;  %v2025_v9 = vunpack.i.h.bf16 %v2023_v36  ;;  %v2024_v10 = vunpack.i.l.bf16 %v2023_v36  ;;  %1919 = vmatpush3.msra.mxu1 %v997_v31  ;;  %v994_v41 = vld [vmem:[%s3105_s3 + $0xf0] sm:$0xff]  ;;  %v976_v46 = vld [vmem:[%s3105_s3 + $0x60] sm:$0xff] }
 0x163   :  { %635 = vmatmul.mubr.f32.gmra.mxu1 %v487_v47  ;;  %v498_v57 = vsel %vm478_vm7, %v493_v55, %v2029_v45  ;;  %v482_v58 = vsel %vm478_vm7, %v476_v56, %v2030_v44  ;;  %1920 = vmatprep.subr.mxu1 %v2192_v0  ;;  %v978_v43 = vld [vmem:[%s3105_s3 + $0x70] sm:$0xff]  ;;  %v977_v44 = vld [vmem:[%s3105_s3 + $0x68] sm:$0xff]  ;;  %v992_v45 = vld [vmem:[%s3105_s3 + $0xe0] sm:$0xff] }
 0x164   :  { %v2033_v54 = vpop.permute.xlu0 %2032  ;;  %v503_v60 = vsel %vm484_vm8, %v498_v57, %v2019_v51  ;;  %v488_v4 = vsel %vm484_vm8, %v482_v58, %v2020_v59  ;;  %1921 = vmatpush3.msra.mxu1 %v996_v32  ;;  %1761 = vmatpush3.msra.mxu0 %v979_v40  ;;  %v991_v47 = vld [vmem:[%s3105_s3 + $0xd8] sm:$0xff]  ;;  %v990_v51 = vld [vmem:[%s3105_s3 + $0xd0] sm:$0xff]  ;;  %v989_v56 = vld [vmem:[%s3105_s3 + $0xc8] sm:$0xff] }
 0x165   :  { %v2035_v62 = vunpack.i.h.bf16 %v2033_v54  ;;  %v2034_v2 = vunpack.i.l.bf16 %v2033_v54  ;;  %639 = vmatprep.mubr.f32.mxu1 %v503_v60  ;;  %1762 = vmatprep.subr.mxu0 %v994_v41  ;;  %v974_v55 = vld [vmem:[%s3105_s3 + $0x50] sm:$0xff]  ;;  %v973_v57 = vld [vmem:[%s3105_s3 + $0x48] sm:$0xff]  ;;  %v988_v58 = vld [vmem:[%s3105_s3 + $0xc0] sm:$0xff] }
 0x166   :  { %1763 = vmatpush3.msra.mxu0 %v978_v43  ;;  %v972_v59 = vld [vmem:[%s3105_s3 + $0x40] sm:$0xff]  ;;  %v987_v54 = vld [vmem:[%s3105_s3 + $0xb8] sm:$0xff]  ;;  %v986_v36 = vld [vmem:[%s3105_s3 + $0xb0] sm:$0xff] }
 0x167   :  { %640 = vmatmul.mubr.f32.gmra.mxu1 %v488_v4  ;;  %v494_v7 = vsel %vm146_vm2, %v323_v6, %v2034_v2  ;;  %v477_v8 = vsel %vm146_vm2, %v288_v5, %v2035_v62  ;;  %1764 = vmatprep.subr.mxu0 %v993_v22  ;;  %v971_v60 = vld [vmem:[%s3105_s3 + $0x38] sm:$0xff]  ;;  %v970_v62 = vld [vmem:[%s3105_s3 + $0x30] sm:$0xff]  ;;  %v985_v2 = vld [vmem:[%s3105_s3 + $0xa8] sm:$0xff] }
 0x168   :  { %v2038_v11 = vpop.permute.xlu0 %2037  ;;  %v499_v16 = vsel %vm478_vm7, %v494_v7, %v2024_v10  ;;  %v483_v17 = vsel %vm478_vm7, %v477_v8, %v2025_v9  ;;  %1765 = vmatpush3.msra.mxu0 %v977_v44  ;;  %v969_v4 = vld [vmem:[%s3105_s3 + $0x28] sm:$0xff]  ;;  %v2668_v5 = vld [vmem:[%s3104_s4 + $0x1] ss:$0 sm:$0xff]  ;;  %v966_v31 = vld [vmem:[%s3105_s3 + $0x10] sm:$0xff] }
 0x169   :  { %v2040_v12 = vunpack.i.h.bf16 %v2038_v11  ;;  %v2039_v14 = vunpack.i.l.bf16 %v2038_v11  ;;  %1766 = vmatprep.subr.mxu0 %v992_v45  ;;  %v981_v32 = vld [vmem:[%s3105_s3 + $0x88] sm:$0xff]  ;;  %v980_v41 = vld [vmem:[%s3105_s3 + $0x80] sm:$0xff] }
 0x16a   :  { %1767 = vmatpush3.msra.mxu0 %v976_v46  ;;  %v965_v40 = vld [vmem:[%s3105_s3 + $0x8] sm:$0xff]  ;;  %v964_v44 = vld [vmem:[%s3105_s3] sm:$0xff] }
 0x16b   :  { %v504_v18 = vsel %vm484_vm8, %v499_v16, %v2039_v14  ;;  %v489_v20 = vsel %vm484_vm8, %v483_v17, %v2040_v12  ;;  %1768 = vmatprep.subr.mxu0 %v991_v47  ;;  %v984_v17 = vld [vmem:[%s3105_s3 + $0xa0] sm:$0xff] }
 0x16c   :  { %644 = vmatprep.mubr.f32.mxu1 %v504_v18  ;;  %1769 = vmatpush3.msra.mxu0 %v975_v49  ;;  %v968_v18 = vld [vmem:[%s3105_s3 + $0x20] sm:$0xff] }
 0x16d   :  { %645 = vmatmul.mubr.f32.gmra.mxu1 %v489_v20  ;;  %1770 = vmatprep.subr.mxu0 %v990_v51 }
 0x16e   :  { %1922 = vmatprep.mubr.msk.f32.mxu1 %vm2193_vm1, %v2192_v0  ;;  %1771 = vmatpush3.msra.mxu0 %v974_v55 }
 0x16f   :  { %1772 = vmatprep.subr.mxu0 %v989_v56 }
 0x170   :  { %1773 = vmatpush3.msra.mxu0 %v973_v57 }
 0x171   :  { %1774 = vmatprep.subr.mxu0 %v988_v58 }
 0x172   :  { %1775 = vmatpush3.msra.mxu0 %v972_v59 }
 0x173   :  { %1776 = vmatprep.subr.mxu0 %v987_v54 }
 0x174   :  { %1777 = vmatpush3.msra.mxu0 %v971_v60 }
 0x175   :  { %1778 = vmatprep.subr.mxu0 %v986_v36 }
 0x176   :  { %1779 = vmatpush3.msra.mxu0 %v970_v62 }
 0x177   :  { %1780 = vmatprep.subr.mxu0 %v985_v2 }
 0x178   :  { %1781 = vmatpush3.msra.mxu0 %v969_v4 }
 0x179   :  { %1782 = vmatprep.subr.mxu0 %v984_v17 }
 0x17a   :  { %1783 = vmatpush3.msra.mxu0 %v968_v18 }
 0x197   :  { %v2574_v21 = vpop.f32.mrf.mxu0 }
 0x199   :  { %v1901_v23 = vpop.f32.mrf.mxu0 }
 0x19a   :  { %v967_v23 = vld [vmem:[%s3105_s3 + $0x18] sm:$0xff] }
 0x19b   :  { %v2576_v24 = vpop.f32.mrf.mxu0 }
 0x19d   :  { %v1904_v25 = vpop.f32.mrf.mxu0 }
 0x19f   :  { %v2578_v52 = vpop.f32.mrf.mxu0 }
 0x1a1   :  { %v1907_v26 = vpop.f32.mrf.mxu0 }
 0x1a3   :  { %v2580_v27 = vpop.f32.mrf.mxu0 }
 0x1a5   :  { %v1910_v28 = vpop.f32.mrf.mxu0 }
 0x1a7   :  { %v2597_v34 = vpop.f32.mrf.mxu0 }
 0x1a9   :  { %v1913_v38 = vpop.f32.mrf.mxu0 }
 0x216   :  { %v1736_v6 = vpop.f32.mrf.mxu1 }
 0x218   :  { %v1737_v7 = vpop.f32.mrf.mxu1 }
 0x219   :  { %v1738_v8 = vadd.f32 %v1737_v7, %v1736_v6 }
 0x21a   :  { %v1739_v9 = vpop.f32.mrf.mxu1 }
 0x21b   :  { %v627_v10 = vadd.f32 %v1738_v8, %v2668_v5 }
 0x21c   :  { %v1740_v11 = vpop.f32.mrf.mxu1 }
 0x21d   :  { %v717_v12 = vadd.f32 %v2574_v21, %v627_v10  ;;  %v1741_v14 = vadd.f32 %v1740_v11, %v1739_v9  ;;  %v983_v21 = vld [vmem:[%s3105_s3 + $0x98] sm:$0xff] }
 0x21e   :  { %1784 = vmatprep.subr.mxu0 %v983_v21 }
 0x21f   :  { %740 = vst.msk [vmem:[#allocation2 + $0x8] sm:$0xff] %vm146_vm2, %v717_v12  ;;  %v632_v16 = vadd.f32 %v1741_v14, %v2668_v5  ;;  %1785 = vmatpush3.msra.mxu0 %v967_v23 }
 0x221   :  { %v722_v20 = vadd.f32 %v2576_v24, %v632_v16  ;;  %v982_v24 = vld [vmem:[%s3105_s3 + $0x90] sm:$0xff] }
 0x222   :  { %1786 = vmatprep.subr.mxu0 %v982_v24 }
 0x223   :  { %741 = vst.msk [vmem:[#allocation2 + $0x10] sm:$0xff] %vm146_vm2, %v722_v20  ;;  %v1742_v25 = vpop.f32.mrf.mxu1  ;;  %1787 = vmatpush3.msra.mxu0 %v966_v31 }
 0x224   :  { %1788 = vmatprep.subr.mxu0 %v981_v32 }
 0x225   :  { %v1743_v26 = vpop.f32.mrf.mxu1  ;;  %1789 = vmatpush3.msra.mxu0 %v965_v40 }
 0x226   :  { %v1744_v28 = vadd.f32 %v1743_v26, %v1742_v25  ;;  %v770_v29 = vld [vmem:[#allocation2 + $0x7] sm:$0xff]  ;;  %1790 = vmatprep.subr.mxu0 %v980_v41 }
 0x227   :  { %v1745_v30 = vpop.f32.mrf.mxu1  ;;  %v760_v39 = vld [vmem:[#allocation2 + $0x3] sm:$0xff]  ;;  %v775_v22 = vmul.f32 %v770_v29, %v2403_v53  ;;  %1791 = vmatpush3.msra.mxu0 %v964_v44 }
 0x228   :  { %v637_v38 = vadd.f32 %v1744_v28, %v2668_v5  ;;  %v765_v57 = vmul.f32 %v760_v39, %v2431_v3  ;;  %v755_v2 = vld [vmem:[#allocation2 + $0x2] sm:$0xff]  ;;  %1937 = vmatprep.subr.mxu0 %v2192_v0 }
 0x229   :  { %v1746_v43 = vpop.f32.mrf.mxu1 }
 0x22a   :  { %v727_v45 = vadd.f32 %v2578_v52, %v637_v38  ;;  %v1747_v46 = vadd.f32 %v1746_v43, %v1745_v30  ;;  %v802_v47 = vld [vmem:[#allocation2 + $0xe] sm:$0xff] }
 0x22b   :  { %v771_v49 = vld [vmem:[#allocation2 + $0xf] sm:$0xff]  ;;  %v2041_v55 = vpack.i.bf16 %v775_v22, %v802_v47 }
 0x22c   :  { %v792_v51 = vld [vmem:[#allocation2 + $0xd] sm:$0xff]  ;;  %v809_v56 = vmul.f32 %v771_v49, %v2431_v3  ;;  %742 = vst.msk [vmem:[#allocation2 + $0x18] sm:$0xff] %vm146_vm2, %v727_v45  ;;  %v642_v54 = vadd.f32 %v1747_v46, %v2668_v5 }
 0x22d   :  { %v797_v58 = vmul.f32 %v792_v51, %v2403_v53  ;;  %v2712_v59 = vld [vmem:[#allocation2 + $0x9] sm:$0xff]  ;;  %v1748_v60 = vpop.f32.mrf.mxu1  ;;  %2042 = vrot.lane.b32.xlu1 %v2041_v55, %s2195_s24 }
 0x22e   :  { %v787_v52 = vmul.f32 %v2712_v59, %v2431_v3  ;;  %1923 = vmatmul.mubr.msk.f32.vlgmr.msra.gmra.mxu1 %vm146_vm2, %v809_v56  ;;  %v732_v62 = vadd.f32 %v2580_v27, %v642_v54  ;;  %v761_v8 = vld [vmem:[#allocation2 + $0xb] sm:$0xff]  ;;  %v776_v27 = vmul.f32 %v771_v49, %v2428_v63 }
 0x22f   :  { %v2051_v36 = vpack.i.bf16 %v765_v57, %v797_v58  ;;  %1925 = vmatprep.mubr.msk.f32.mxu1 %vm2193_vm1, %v2192_v0  ;;  %v1749_v4 = vpop.f32.mrf.mxu1  ;;  %v766_v12 = vmul.f32 %v761_v8, %v2456_v19  ;;  %v756_v25 = vld [vmem:[#allocation2 + $0xa] sm:$0xff] }
 0x230   :  { %v2046_v6 = vpack.i.bf16 %v755_v2, %v787_v52  ;;  %743 = vst.msk [vmem:[#allocation2 + $0x20] sm:$0xff] %vm146_vm2, %v732_v62  ;;  %v1750_v7 = vadd.f32 %v1749_v4, %v1748_v60 }
 0x231   :  { %2052 = vrot.lane.b32.xlu0 %v2051_v36, %s2197_s26 }
 0x232   :  { %2047 = vrot.lane.b32.xlu1 %v2046_v6, %s2196_s25  ;;  %v647_v9 = vadd.f32 %v1750_v7, %v2668_v5  ;;  %v808_v6 = vld [vmem:[#allocation2 + $0x2f] sm:$0xf] }
 0x233   :  { %v803_v10 = vld [vmem:[#allocation2 + $0x16] sm:$0xff] }
 0x234   :  { %v772_v11 = vld [vmem:[#allocation2 + $0x17] sm:$0xff]  ;;  %v737_v16 = vadd.f32 %v2597_v34, %v647_v9  ;;  %v2056_v17 = vpack.i.bf16 %v776_v27, %v803_v10  ;;  %v813_v9 = vmul.f32 %v808_v6, %v2522_v13  ;;  %v796_v10 = vld [vmem:[#allocation2 + $0x2d] sm:$0xf] }
 0x235   :  { %v793_v14 = vld [vmem:[#allocation2 + $0x15] sm:$0xff]  ;;  %v810_v18 = vmul.f32 %v772_v11, %v2456_v19  ;;  %v777_v31 = vmul.f32 %v772_v11, %v2485_v35 }
 0x236   :  { %v798_v20 = vmul.f32 %v793_v14, %v2428_v63  ;;  %v2733_v21 = vld [vmem:[#allocation2 + $0x11] sm:$0xff]  ;;  %744 = vst.msk [vmem:[#allocation2 + $0x28] sm:$0xf] %vm153_vm4, %v737_v16  ;;  %2057 = vrot.lane.b32.xlu0 %v2056_v17, %s2195_s24 }
 0x237   :  { %v788_v23 = vmul.f32 %v2733_v21, %v2456_v19  ;;  %1926 = vmatmul.mubr.msk.f32.gmra.mxu1 %vm146_vm2, %v810_v18  ;;  %v762_v26 = vld [vmem:[#allocation2 + $0x13] sm:$0xff]  ;;  %v773_v34 = vld [vmem:[#allocation2 + $0x1f] sm:$0xff]  ;;  %v806_v14 = vld [vmem:[#allocation2 + $0x2e] sm:$0xf] }
 0x238   :  { %v2066_v5 = vpack.i.bf16 %v766_v12, %v798_v20  ;;  %1928 = vmatprep.mubr.msk.f32.mxu1 %vm2193_vm1, %v2192_v0  ;;  %v804_v24 = vld [vmem:[#allocation2 + $0x1e] sm:$0xff]  ;;  %v811_v30 = vmul.f32 %v773_v34, %v2480_v33  ;;  %v767_v40 = vmul.f32 %v762_v26, %v2480_v33  ;;  %v757_v22 = vld [vmem:[#allocation2 + $0x12] sm:$0xff]  ;;  %v778_v2 = vmul.f32 %v773_v34, %v2513_v1 }
 0x239   :  { %v794_v28 = vld [vmem:[#allocation2 + $0x1d] sm:$0xff]  ;;  %v2061_v29 = vpack.i.bf16 %v756_v25, %v788_v23  ;;  %v2071_v39 = vpack.i.bf16 %v777_v31, %v804_v24 }
 0x23a   :  { %2067 = vrot.lane.b32.xlu1 %v2066_v5, %s2197_s26  ;;  %v799_v32 = vmul.f32 %v794_v28, %v2485_v35  ;;  %v2746_v38 = vld [vmem:[#allocation2 + $0x19] sm:$0xff]  ;;  %v764_v36 = vld [vmem:[#allocation2 + $0x23] sm:$0xf] }
 0x23b   :  { %2062 = vrot.lane.b32.xlu0 %v2061_v29, %s2196_s25  ;;  %1929 = vmatmul.mubr.msk.f32.gmra.mxu1 %vm146_vm2, %v811_v30  ;;  %v789_v41 = vmul.f32 %v2746_v38, %v2480_v33  ;;  %v763_v44 = vld [vmem:[#allocation2 + $0x1b] sm:$0xff]  ;;  %v769_v8 = vmul.f32 %v764_v36, %v2522_v13  ;;  %v780_v29 = vld [vmem:[#allocation2 + $0x8] sm:$0xff] }
 0x23c   :  { %1931 = vmatprep.mubr.msk.f32.mxu1 %vm2193_vm1, %v2192_v0  ;;  %v2081_v43 = vpack.i.bf16 %v767_v40, %v799_v32  ;;  %v758_v57 = vld [vmem:[#allocation2 + $0x1a] sm:$0xff]  ;;  %v768_v52 = vmul.f32 %v763_v44, %v2497_v48  ;;  %v759_v27 = vld [vmem:[#allocation2 + $0x22] sm:$0xf] }
 0x23d   :  { %v807_v45 = vld [vmem:[#allocation2 + $0x27] sm:$0xff]  ;;  %v2076_v49 = vpack.i.bf16 %v757_v22, %v789_v41  ;;  %v2096_v16 = vpack.i.bf16 %v769_v8, %v796_v10 }
 0x23e   :  { %2072 = vrot.lane.b32.xlu1 %v2071_v39, %s2195_s24  ;;  %v785_v46 = vld [vmem:[#allocation2 + $0x21] sm:$0xff]  ;;  %v812_v51 = vmul.f32 %v807_v45, %v2497_v48  ;;  %v786_v58 = vld [vmem:[#allocation2 + $0x29] sm:$0xf] }
 0x23f   :  { %v795_v47 = vld [vmem:[#allocation2 + $0x25] sm:$0xff]  ;;  %2082 = vrot.lane.b32.xlu0 %v2081_v43, %s2197_s26  ;;  %v790_v55 = vmul.f32 %v785_v46, %v2497_v48  ;;  %v791_v4 = vmul.f32 %v786_v58, %v2522_v13  ;;  %v781_v58 = vld [vmem:[#allocation2 + $0x10] sm:$0xff] }
 0x240   :  { %v800_v56 = vmul.f32 %v795_v47, %v2513_v1  ;;  %1932 = vmatmul.mubr.msk.f32.gmra.mxu1 %vm146_vm2, %v812_v51  ;;  %v805_v60 = vld [vmem:[#allocation2 + $0x26] sm:$0xff]  ;;  %v751_v51 = vmul.f32 %v2712_v59, %v2428_v63 }
 0x241   :  { %v2086_v54 = vpack.i.bf16 %v758_v57, %v790_v55  ;;  %1934 = vmatprep.mubr.msk.f32.mxu1 %vm2193_vm1, %v2192_v0  ;;  %v2091_v7 = vpack.i.bf16 %v778_v2, %v805_v60  ;;  %v2106_v11 = vpack.i.bf16 %v759_v27, %v791_v4  ;;  %v774_v12 = vld [vmem:[#allocation2 + $0x27] sm:$0xf]  ;;  %v752_v27 = vmul.f32 %v2733_v21, %v2485_v35 }
 0x242   :  { %2077 = vrot.lane.b32.xlu1 %v2076_v49, %s2196_s25  ;;  %v2101_v62 = vpack.i.bf16 %v768_v52, %v800_v56  ;;  %v2111_v17 = vpack.i.bf16 %v774_v12, %v806_v14  ;;  %v745_v20 = vld [vmem:[#allocation2 + $0x1] sm:$0xff]  ;;  %v753_v21 = vmul.f32 %v2746_v38, %v2513_v1 }
 0x243   :  { %2087 = vrot.lane.b32.xlu0 %v2086_v54, %s2196_s25  ;;  %v750_v25 = vmul.f32 %v745_v20, %v2403_v53 }
 0x244   :  { %1935 = vmatmul.mubr.msk.f32.gmra.mxu1 %vm146_vm2, %v813_v9 }
 0x246   :  { %2102 = vrot.lane.b32.xlu1 %v2101_v62, %s2197_s26 }
 0x247   :  { %2092 = vrot.lane.b32.xlu0 %v2091_v7, %s2195_s24 }
 0x24a   :  { %2107 = vrot.lane.b32.xlu1 %v2106_v11, %s2196_s25 }
 0x24b   :  { %2097 = vrot.lane.b32.xlu0 %v2096_v16, %s2197_s26 }
 0x24e   :  { %2112 = vrot.lane.b32.xlu1 %v2111_v17, %s2195_s24  ;;  %v782_v17 = vld [vmem:[#allocation2 + $0x18] sm:$0xff] }
 0x29f   :  { %v2043_v18 = vpop.permute.xlu1 %2042 }
 0x2a0   :  { %v2045_v30 = vunpack.i.h.bf16 %v2043_v18  ;;  %v2044_v31 = vunpack.i.l.bf16 %v2043_v18 }
 0x2a3   :  { %v2053_v23 = vpop.permute.xlu0 %2052 }
 0x2a4   :  { %v2048_v5 = vpop.permute.xlu1 %2047  ;;  %v2055_v24 = vunpack.i.h.bf16 %v2053_v23  ;;  %v2054_v28 = vunpack.i.l.bf16 %v2053_v23 }
 0x2a5   :  { %v2050_v26 = vunpack.i.h.bf16 %v2048_v5  ;;  %v2049_v34 = vunpack.i.l.bf16 %v2048_v5 }
 0x2a7   :  { %v934_v32 = vsel %vm146_vm2, %v750_v25, %v2050_v26  ;;  %v949_v39 = vsel %vm146_vm2, %v780_v29, %v2049_v34 }
 0x2a8   :  { %v954_v40 = vsel %vm478_vm7, %v949_v39, %v2054_v28  ;;  %v939_v41 = vsel %vm478_vm7, %v934_v32, %v2055_v24  ;;  %v2058_v43 = vpop.permute.xlu0 %2057 }
 0x2a9   :  { %v959_v22 = vsel %vm484_vm8, %v954_v40, %v2044_v31  ;;  %v944_v44 = vsel %vm484_vm8, %v939_v41, %v2045_v30  ;;  %v2060_v54 = vunpack.i.h.bf16 %v2058_v43  ;;  %v2059_v52 = vunpack.i.l.bf16 %v2058_v43  ;;  %v783_v31 = vld [vmem:[#allocation2 + $0x20] sm:$0xff] }
 0x2aa   :  { %1083 = vmatprep.mubr.f32.mxu0 %v959_v22 }
 0x2ab   :  { %1084 = vmatmul.mubr.f32.vlgmr.msra.gmra.mxu0 %v944_v44 }
 0x2ac   :  { %v2068_v45 = vpop.permute.xlu1 %2067 }
 0x2ad   :  { %v2063_v46 = vpop.permute.xlu0 %2062  ;;  %v2070_v55 = vunpack.i.h.bf16 %v2068_v45  ;;  %v2069_v56 = vunpack.i.l.bf16 %v2068_v45 }
 0x2ae   :  { %v2065_v47 = vunpack.i.h.bf16 %v2063_v46  ;;  %v2064_v49 = vunpack.i.l.bf16 %v2063_v46 }
 0x2b0   :  { %v2073_v57 = vpop.permute.xlu1 %2072  ;;  %v950_v60 = vsel %vm146_vm2, %v781_v58, %v2064_v49  ;;  %v935_v36 = vsel %vm146_vm2, %v751_v51, %v2065_v47 }
 0x2b1   :  { %v2083_v62 = vpop.permute.xlu0 %2082  ;;  %v955_v2 = vsel %vm478_vm7, %v950_v60, %v2069_v56  ;;  %v940_v4 = vsel %vm478_vm7, %v935_v36, %v2070_v55  ;;  %v2075_v10 = vunpack.i.h.bf16 %v2073_v57  ;;  %v2074_v11 = vunpack.i.l.bf16 %v2073_v57  ;;  %v784_v55 = vld [vmem:[#allocation2 + $0x28] sm:$0xf]  ;;  %v749_v56 = vld [vmem:[#allocation2 + $0x21] sm:$0xf] }
 0x2b2   :  { %v960_v6 = vsel %vm484_vm8, %v955_v2, %v2059_v52  ;;  %v945_v7 = vsel %vm484_vm8, %v940_v4, %v2060_v54  ;;  %v2085_v12 = vunpack.i.h.bf16 %v2083_v62  ;;  %v2084_v14 = vunpack.i.l.bf16 %v2083_v62 }
 0x2b3   :  { %1088 = vmatprep.mubr.f32.mxu0 %v960_v6 }
 0x2b4   :  { %v2078_v59 = vpop.permute.xlu1 %2077  ;;  %1089 = vmatmul.mubr.f32.gmra.mxu0 %v945_v7 }
 0x2b5   :  { %v2080_v8 = vunpack.i.h.bf16 %v2078_v59  ;;  %v2079_v9 = vunpack.i.l.bf16 %v2078_v59  ;;  %v2088_v16 = vpop.permute.xlu0 %2087 }
 0x2b6   :  { %v2090_v18 = vunpack.i.h.bf16 %v2088_v16  ;;  %v2089_v20 = vunpack.i.l.bf16 %v2088_v16 }
 0x2b7   :  { %v951_v23 = vsel %vm146_vm2, %v782_v17, %v2079_v9  ;;  %v936_v5 = vsel %vm146_vm2, %v752_v27, %v2080_v8  ;;  %v1457_v17 = vld [vmem:[%s3103_s2 + $0x110] sm:$0xff] }
 0x2b8   :  { %v2103_v25 = vpop.permute.xlu1 %2102  ;;  %v956_v26 = vsel %vm478_vm7, %v951_v23, %v2084_v14  ;;  %v941_v34 = vsel %vm478_vm7, %v936_v5, %v2085_v12  ;;  %v952_v39 = vsel %vm146_vm2, %v783_v31, %v2089_v20  ;;  %v937_v40 = vsel %vm146_vm2, %v753_v21, %v2090_v18  ;;  %v1458_v14 = vld [vmem:[%s3103_s2 + $0x118] sm:$0xff]  ;;  %v1456_v18 = vld [vmem:[%s3103_s2 + $0x108] sm:$0xff]  ;;  %v1455_v20 = vld [vmem:[%s3103_s2 + $0x100] sm:$0xff] }
 0x2b9   :  { %v2105_v24 = vunpack.i.h.bf16 %v2103_v25  ;;  %v2104_v28 = vunpack.i.l.bf16 %v2103_v25  ;;  %v961_v29 = vsel %vm484_vm8, %v956_v26, %v2074_v11  ;;  %v946_v30 = vsel %vm484_vm8, %v941_v34, %v2075_v10  ;;  %v2093_v32 = vpop.permute.xlu0 %2092  ;;  %1938 = vmatpush3.msra.mxu0 %v1458_v14  ;;  %v1454_v25 = vld [vmem:[%s3103_s2 + $0xf8] sm:$0xff]  ;;  %v1453_v34 = vld [vmem:[%s3103_s2 + $0xf0] sm:$0xff] }
 0x2ba   :  { %1093 = vmatprep.mubr.f32.mxu0 %v961_v29  ;;  %v2095_v41 = vunpack.i.h.bf16 %v2093_v32  ;;  %v2094_v43 = vunpack.i.l.bf16 %v2093_v32  ;;  %1939 = vmatprep.subr.mxu0 %v2192_v0  ;;  %v1438_v26 = vld [vmem:[%s3103_s2 + $0x78] sm:$0xff]  ;;  %v1437_v21 = vld [vmem:[%s3103_s2 + $0x70] sm:$0xff]  ;;  %v1451_v29 = vld [vmem:[%s3103_s2 + $0xe0] sm:$0xff] }
 0x2bb   :  { %1094 = vmatmul.mubr.f32.gmra.mxu0 %v946_v30  ;;  %v957_v22 = vsel %vm478_vm7, %v952_v39, %v2104_v28  ;;  %v942_v38 = vsel %vm478_vm7, %v937_v40, %v2105_v24  ;;  %1816 = vmatprep.subr.mxu1 %v1454_v25  ;;  %v1452_v24 = vld [vmem:[%s3103_s2 + $0xe8] sm:$0xff]  ;;  %v1435_v30 = vld [vmem:[%s3103_s2 + $0x60] sm:$0xff]  ;;  %v1450_v31 = vld [vmem:[%s3103_s2 + $0xd8] sm:$0xff] }
 0x2bc   :  { %v2108_v44 = vpop.permute.xlu1 %2107  ;;  %v962_v47 = vsel %vm484_vm8, %v957_v22, %v2094_v43  ;;  %v947_v49 = vsel %vm484_vm8, %v942_v38, %v2095_v41  ;;  %1940 = vmatpush3.msra.mxu0 %v1457_v17  ;;  %1817 = vmatpush3.msra.mxu1 %v1438_v26  ;;  %v1436_v28 = vld [vmem:[%s3103_s2 + $0x68] sm:$0xff]  ;;  %v1434_v32 = vld [vmem:[%s3103_s2 + $0x58] sm:$0xff]  ;;  %v1449_v39 = vld [vmem:[%s3103_s2 + $0xd0] sm:$0xff] }
 0x2bd   :  { %v2110_v45 = vunpack.i.h.bf16 %v2108_v44  ;;  %v2109_v46 = vunpack.i.l.bf16 %v2108_v44  ;;  %v2098_v51 = vpop.permute.xlu0 %2097  ;;  %1098 = vmatprep.mubr.f32.mxu0 %v962_v47  ;;  %1941 = vmatprep.subr.mxu0 %v2192_v0  ;;  %v1433_v40 = vld [vmem:[%s3103_s2 + $0x50] sm:$0xff]  ;;  %v1448_v41 = vld [vmem:[%s3103_s2 + $0xc8] sm:$0xff]  ;;  %v1447_v22 = vld [vmem:[%s3103_s2 + $0xc0] sm:$0xff] }
 0x2be   :  { %v2100_v57 = vunpack.i.h.bf16 %v2098_v51  ;;  %v2099_v58 = vunpack.i.l.bf16 %v2098_v51  ;;  %1942 = vmatpush3.msra.mxu0 %v1456_v18  ;;  %1818 = vmatprep.subr.mxu1 %v1453_v34  ;;  %v1432_v43 = vld [vmem:[%s3103_s2 + $0x48] sm:$0xff]  ;;  %v1431_v38 = vld [vmem:[%s3103_s2 + $0x40] sm:$0xff]  ;;  %v1446_v44 = vld [vmem:[%s3103_s2 + $0xb8] sm:$0xff] }
 0x2bf   :  { %1099 = vmatmul.mubr.f32.gmra.mxu0 %v947_v49  ;;  %v953_v54 = vsel %vm146_vm2, %v784_v55, %v2109_v46  ;;  %v938_v52 = vsel %vm146_vm2, %v749_v56, %v2110_v45  ;;  %1943 = vmatprep.subr.mxu0 %v2192_v0  ;;  %v1430_v45 = vld [vmem:[%s3103_s2 + $0x38] sm:$0xff]  ;;  %v1445_v46 = vld [vmem:[%s3103_s2 + $0xb0] sm:$0xff]  ;;  %v1444_v49 = vld [vmem:[%s3103_s2 + $0xa8] sm:$0xff] }
 0x2c0   :  { %v2113_v60 = vpop.permute.xlu1 %2112  ;;  %v958_v2 = vsel %vm478_vm7, %v953_v54, %v2099_v58  ;;  %v943_v4 = vsel %vm478_vm7, %v938_v52, %v2100_v57  ;;  %1944 = vmatpush3.msra.mxu0 %v1455_v20  ;;  %1819 = vmatpush3.msra.mxu1 %v1437_v21  ;;  %v1429_v47 = vld [vmem:[%s3103_s2 + $0x30] sm:$0xff]  ;;  %v1428_v51 = vld [vmem:[%s3103_s2 + $0x28] sm:$0xff]  ;;  %v2909_v56 = vld [vmem:[%s3104_s4 + $0x2] ss:$0 sm:$0xff] }
 0x2c1   :  { %v2115_v36 = vunpack.i.h.bf16 %v2113_v60  ;;  %v2114_v62 = vunpack.i.l.bf16 %v2113_v60  ;;  %1820 = vmatprep.subr.mxu1 %v1452_v24  ;;  %v1441_v20 = vld [vmem:[%s3103_s2 + $0x90] sm:$0xff]  ;;  %v1440_v25 = vld [vmem:[%s3103_s2 + $0x88] sm:$0xff] }
 0x2c2   :  { %1821 = vmatpush3.msra.mxu1 %v1436_v28  ;;  %v1424_v24 = vld [vmem:[%s3103_s2 + $0x8] sm:$0xff]  ;;  %v1439_v28 = vld [vmem:[%s3103_s2 + $0x80] sm:$0xff] }
 0x2c3   :  { %v963_v6 = vsel %vm484_vm8, %v958_v2, %v2114_v62  ;;  %v948_v7 = vsel %vm484_vm8, %v943_v4, %v2115_v36  ;;  %1822 = vmatprep.subr.mxu1 %v1451_v29 }
 0x2c4   :  { %1103 = vmatprep.mubr.f32.mxu0 %v963_v6  ;;  %1823 = vmatpush3.msra.mxu1 %v1435_v30  ;;  %v1443_v6 = vld [vmem:[%s3103_s2 + $0xa0] sm:$0xff] }
 0x2c5   :  { %1104 = vmatmul.mubr.f32.gmra.mxu0 %v948_v7  ;;  %1824 = vmatprep.subr.mxu1 %v1450_v31  ;;  %v1427_v7 = vld [vmem:[%s3103_s2 + $0x20] sm:$0xff] }
 0x2c6   :  { %1945 = vmatprep.mubr.msk.f32.mxu0 %vm2193_vm1, %v2192_v0  ;;  %1825 = vmatpush3.msra.mxu1 %v1434_v32  ;;  %v1423_v30 = vld [vmem:[%s3103_s2] sm:$0xff] }
 0x2c7   :  { %1826 = vmatprep.subr.mxu1 %v1449_v39 }
 0x2c8   :  { %1827 = vmatpush3.msra.mxu1 %v1433_v40 }
 0x2c9   :  { %1828 = vmatprep.subr.mxu1 %v1448_v41 }
 0x2ca   :  { %1829 = vmatpush3.msra.mxu1 %v1432_v43 }
 0x2cb   :  { %1830 = vmatprep.subr.mxu1 %v1447_v22 }
 0x2cc   :  { %1831 = vmatpush3.msra.mxu1 %v1431_v38 }
 0x2cd   :  { %1832 = vmatprep.subr.mxu1 %v1446_v44 }
 0x2ce   :  { %1833 = vmatpush3.msra.mxu1 %v1430_v45 }
 0x2cf   :  { %1834 = vmatprep.subr.mxu1 %v1445_v46 }
 0x2d0   :  { %1835 = vmatpush3.msra.mxu1 %v1429_v47 }
 0x2d1   :  { %1836 = vmatprep.subr.mxu1 %v1444_v49 }
 0x2d2   :  { %1837 = vmatpush3.msra.mxu1 %v1428_v51 }
 0x2d3   :  { %1838 = vmatprep.subr.mxu1 %v1443_v6 }
 0x2d4   :  { %1839 = vmatpush3.msra.mxu1 %v1427_v7 }
 0x2ee   :  { %v2815_v59 = vpop.f32.mrf.mxu1 }
 0x2f0   :  { %v1924_v8 = vpop.f32.mrf.mxu1 }
 0x2f7   :  { %v2817_v9 = vpop.f32.mrf.mxu1 }
 0x2f9   :  { %v1927_v27 = vpop.f32.mrf.mxu1 }
 0x2fa   :  { %v1442_v27 = vld [vmem:[%s3103_s2 + $0x98] sm:$0xff] }
 0x2fb   :  { %v2819_v10 = vpop.f32.mrf.mxu1  ;;  %1840 = vmatprep.subr.mxu1 %v1442_v27 }
 0x2fd   :  { %v1930_v11 = vpop.f32.mrf.mxu1 }
 0x2fe   :  { %v1426_v11 = vld [vmem:[%s3103_s2 + $0x18] sm:$0xff] }
 0x2ff   :  { %1841 = vmatpush3.msra.mxu1 %v1426_v11 }
 0x300   :  { %v2821_v12 = vpop.f32.mrf.mxu1  ;;  %1842 = vmatprep.subr.mxu1 %v1441_v20 }
 0x302   :  { %v1933_v16 = vpop.f32.mrf.mxu1 }
 0x304   :  { %v2838_v23 = vpop.f32.mrf.mxu1 }
 0x306   :  { %v1936_v5 = vpop.f32.mrf.mxu1 }
 0x307   :  { %v1425_v5 = vld [vmem:[%s3103_s2 + $0x10] sm:$0xff] }
 0x308   :  { %1843 = vmatpush3.msra.mxu1 %v1425_v5 }
 0x309   :  { %1844 = vmatprep.subr.mxu1 %v1440_v25 }
 0x30a   :  { %1845 = vmatpush3.msra.mxu1 %v1424_v24 }
 0x30b   :  { %1846 = vmatprep.subr.mxu1 %v1439_v28 }
 0x30c   :  { %1847 = vmatpush3.msra.mxu1 %v1423_v30 }
 0x36b   :  { %v1792_v55 = vpop.f32.mrf.mxu0 }
 0x36d   :  { %v1793_v57 = vpop.f32.mrf.mxu0 }
 0x36e   :  { %v1794_v58 = vadd.f32 %v1793_v57, %v1792_v55 }
 0x370   :  { %v1086_v54 = vadd.f32 %v1794_v58, %v2909_v56 }
 0x372   :  { %v2913_v52 = vadd.f32 %v2815_v59, %v1086_v54 }
 0x374   :  { %1199 = vst.msk [vmem:[#allocation2 + $0x8] sm:$0xff] %vm146_vm2, %v2913_v52  ;;  %v1795_v60 = vpop.f32.mrf.mxu0 }
 0x376   :  { %v1796_v36 = vpop.f32.mrf.mxu0 }
 0x377   :  { %v1797_v62 = vadd.f32 %v1796_v36, %v1795_v60 }
 0x379   :  { %v1091_v2 = vadd.f32 %v1797_v62, %v2909_v56 }
 0x37b   :  { %v1798_v4 = vpop.f32.mrf.mxu0  ;;  %v2925_v59 = vadd.f32 %v2817_v9, %v1091_v2  ;;  %v1229_v17 = vld [vmem:[#allocation2 + $0x7] sm:$0xff] }
 0x37c   :  { %v1219_v21 = vld [vmem:[#allocation2 + $0x3] sm:$0xff] }
 0x37d   :  { %v1799_v8 = vpop.f32.mrf.mxu0  ;;  %1200 = vst.msk [vmem:[#allocation2 + $0x10] sm:$0xff] %vm146_vm2, %v2925_v59  ;;  %v1224_v40 = vmul.f32 %v1219_v21, %v2431_v3  ;;  %v1214_v55 = vld [vmem:[#allocation2 + $0x2] sm:$0xff] }
 0x37e   :  { %v1800_v14 = vadd.f32 %v1799_v8, %v1798_v4 }
 0x37f   :  { %v1801_v16 = vpop.f32.mrf.mxu0 }
 0x380   :  { %v1096_v9 = vadd.f32 %v1800_v14, %v2909_v56 }
 0x381   :  { %v1802_v18 = vpop.f32.mrf.mxu0 }
 0x382   :  { %v2946_v26 = vadd.f32 %v2819_v10, %v1096_v9  ;;  %v1803_v34 = vadd.f32 %v1802_v18, %v1801_v16  ;;  %v1234_v10 = vmul.f32 %v1229_v17, %v2403_v53 }
 0x384   :  { %1201 = vst.msk [vmem:[#allocation2 + $0x18] sm:$0xff] %vm146_vm2, %v2946_v26  ;;  %v1101_v29 = vadd.f32 %v1803_v34, %v2909_v56  ;;  %v1230_v32 = vld [vmem:[#allocation2 + $0xf] sm:$0xff] }
 0x385   :  { %v1804_v31 = vpop.f32.mrf.mxu0  ;;  %v1261_v39 = vld [vmem:[#allocation2 + $0xe] sm:$0xff]  ;;  %v1268_v22 = vmul.f32 %v1230_v32, %v2431_v3  ;;  %v1235_v58 = vmul.f32 %v1230_v32, %v2428_v63 }
 0x386   :  { %v1251_v41 = vld [vmem:[#allocation2 + $0xd] sm:$0xff]  ;;  %v2963_v43 = vadd.f32 %v2821_v12, %v1101_v29  ;;  %v2116_v38 = vpack.i.bf16 %v1234_v10, %v1261_v39 }
 0x387   :  { %v1256_v44 = vmul.f32 %v1251_v41, %v2403_v53  ;;  %v2967_v45 = vld [vmem:[#allocation2 + $0x9] sm:$0xff]  ;;  %v1805_v46 = vpop.f32.mrf.mxu0  ;;  %1946 = vmatmul.mubr.msk.f32.vlgmr.msra.gmra.mxu0 %vm146_vm2, %v1268_v22 }
 0x388   :  { %v1246_v47 = vmul.f32 %v2967_v45, %v2431_v3  ;;  %1202 = vst.msk [vmem:[#allocation2 + $0x20] sm:$0xff] %vm146_vm2, %v2963_v43  ;;  %v1806_v49 = vadd.f32 %v1805_v46, %v1804_v31  ;;  %2117 = vrot.lane.b32.xlu0 %v2116_v38, %s2195_s24  ;;  %v1220_v51 = vld [vmem:[#allocation2 + $0xb] sm:$0xff]  ;;  %1948 = vmatprep.mubr.msk.f32.mxu0 %vm2193_vm1, %v2192_v0 }
 0x389   :  { %v2126_v12 = vpack.i.bf16 %v1224_v40, %v1256_v44  ;;  %v1225_v36 = vmul.f32 %v1220_v51, %v2456_v19  ;;  %v1215_v27 = vld [vmem:[#allocation2 + $0xa] sm:$0xff] }
 0x38a   :  { %v1106_v57 = vadd.f32 %v1806_v49, %v2909_v56  ;;  %v2121_v3 = vpack.i.bf16 %v1214_v55, %v1246_v47  ;;  %v1267_v55 = vld [vmem:[#allocation2 + $0x2f] sm:$0xf] }
 0x38b   :  { %2127 = vrot.lane.b32.xlu1 %v2126_v12, %s2197_s26  ;;  %v1231_v54 = vld [vmem:[#allocation2 + $0x17] sm:$0xff] }
 0x38c   :  { %v1262_v60 = vld [vmem:[#allocation2 + $0x16] sm:$0xff]  ;;  %v2982_v2 = vadd.f32 %v2838_v23, %v1106_v57  ;;  %2122 = vrot.lane.b32.xlu0 %v2121_v3, %s2196_s25  ;;  %v1269_v4 = vmul.f32 %v1231_v54, %v2456_v19  ;;  %v1236_v18 = vmul.f32 %v1231_v54, %v2485_v35  ;;  %v1255_v54 = vld [vmem:[#allocation2 + $0x2d] sm:$0xf] }
 0x38d   :  { %v1252_v62 = vld [vmem:[#allocation2 + $0x15] sm:$0xff]  ;;  %v2131_v6 = vpack.i.bf16 %v1235_v58, %v1262_v60 }
 0x38e   :  { %v1257_v56 = vmul.f32 %v1252_v62, %v2428_v63  ;;  %v2987_v7 = vld [vmem:[#allocation2 + $0x11] sm:$0xff]  ;;  %1203 = vst.msk [vmem:[#allocation2 + $0x28] sm:$0xf] %vm153_vm4, %v2982_v2  ;;  %1949 = vmatmul.mubr.msk.f32.gmra.mxu0 %vm146_vm2, %v1269_v4 }
 0x38f   :  { %v1247_v8 = vmul.f32 %v2987_v7, %v2456_v19  ;;  %2132 = vrot.lane.b32.xlu1 %v2131_v6, %s2195_s24  ;;  %v1221_v11 = vld [vmem:[#allocation2 + $0x13] sm:$0xff]  ;;  %1951 = vmatprep.mubr.msk.f32.mxu0 %vm2193_vm1, %v2192_v0  ;;  %v1232_v14 = vld [vmem:[#allocation2 + $0x1f] sm:$0xff] }
 0x390   :  { %v2141_v23 = vpack.i.bf16 %v1225_v36, %v1257_v56  ;;  %v1263_v16 = vld [vmem:[#allocation2 + $0x1e] sm:$0xff]  ;;  %v1270_v19 = vmul.f32 %v1232_v14, %v2480_v33  ;;  %v1226_v34 = vmul.f32 %v1221_v11, %v2480_v33  ;;  %v1216_v28 = vld [vmem:[#allocation2 + $0x12] sm:$0xff]  ;;  %v1237_v12 = vmul.f32 %v1232_v14, %v2513_v1  ;;  %v1265_v36 = vld [vmem:[#allocation2 + $0x2e] sm:$0xf] }
 0x391   :  { %v1253_v9 = vld [vmem:[#allocation2 + $0x1d] sm:$0xff]  ;;  %v2136_v17 = vpack.i.bf16 %v1215_v27, %v1247_v8  ;;  %v2146_v25 = vpack.i.bf16 %v1236_v18, %v1263_v16 }
 0x392   :  { %2142 = vrot.lane.b32.xlu0 %v2141_v23, %s2197_s26  ;;  %v1258_v20 = vmul.f32 %v1253_v9, %v2485_v35  ;;  %v3001_v5 = vld [vmem:[#allocation2 + $0x19] sm:$0xff]  ;;  %1952 = vmatmul.mubr.msk.f32.gmra.mxu0 %vm146_vm2, %v1270_v19  ;;  %v1223_v47 = vld [vmem:[#allocation2 + $0x23] sm:$0xf]  ;;  %v1239_v19 = vld [vmem:[#allocation2 + $0x8] sm:$0xff] }
 0x393   :  { %2137 = vrot.lane.b32.xlu1 %v2136_v17, %s2196_s25  ;;  %v1248_v21 = vmul.f32 %v3001_v5, %v2480_v33  ;;  %1954 = vmatprep.mubr.msk.f32.mxu0 %vm2193_vm1, %v2192_v0  ;;  %v1222_v29 = vld [vmem:[#allocation2 + $0x1b] sm:$0xff]  ;;  %v1228_v3 = vmul.f32 %v1223_v47, %v2522_v13 }
 0x394   :  { %v2156_v24 = vpack.i.bf16 %v1226_v34, %v1258_v20  ;;  %v1217_v41 = vld [vmem:[#allocation2 + $0x1a] sm:$0xff]  ;;  %v1227_v44 = vmul.f32 %v1222_v29, %v2497_v48  ;;  %v1218_v58 = vld [vmem:[#allocation2 + $0x22] sm:$0xf] }
 0x395   :  { %v1266_v10 = vld [vmem:[#allocation2 + $0x27] sm:$0xff]  ;;  %v2151_v39 = vpack.i.bf16 %v1216_v28, %v1248_v21  ;;  %v2181_v62 = vpack.i.bf16 %v1228_v3, %v1255_v54 }
 0x396   :  { %2147 = vrot.lane.b32.xlu0 %v2146_v25, %s2195_s24  ;;  %v1244_v30 = vld [vmem:[#allocation2 + $0x21] sm:$0xff]  ;;  %v1271_v32 = vmul.f32 %v1266_v10, %v2497_v48  ;;  %v1245_v22 = vld [vmem:[#allocation2 + $0x29] sm:$0xf]  ;;  %v1210_v10 = vmul.f32 %v2967_v45, %v2428_v63 }
 0x397   :  { %v1254_v31 = vld [vmem:[#allocation2 + $0x25] sm:$0xff]  ;;  %2157 = vrot.lane.b32.xlu1 %v2156_v24, %s2197_s26  ;;  %v1249_v40 = vmul.f32 %v1244_v30, %v2497_v48  ;;  %v1250_v51 = vmul.f32 %v1245_v22, %v2522_v13  ;;  %v1272_v48 = vmul.f32 %v1267_v55, %v2522_v13 }
 0x398   :  { %v1259_v33 = vmul.f32 %v1254_v31, %v2513_v1  ;;  %1955 = vmatmul.mubr.msk.f32.gmra.mxu0 %vm146_vm2, %v1271_v32  ;;  %v1264_v46 = vld [vmem:[#allocation2 + $0x26] sm:$0xff] }
 0x399   :  { %v2161_v38 = vpack.i.bf16 %v1217_v41, %v1249_v40  ;;  %1957 = vmatprep.mubr.msk.f32.mxu0 %vm2193_vm1, %v2192_v0  ;;  %v2166_v57 = vpack.i.bf16 %v1237_v12, %v1264_v46  ;;  %v2176_v0 = vpack.i.bf16 %v1218_v58, %v1250_v51  ;;  %v1233_v60 = vld [vmem:[#allocation2 + $0x27] sm:$0xf]  ;;  %v1211_v51 = vmul.f32 %v2987_v7, %v2485_v35 }
 0x39a   :  { %2152 = vrot.lane.b32.xlu0 %v2151_v39, %s2196_s25  ;;  %v2171_v49 = vpack.i.bf16 %v1227_v44, %v1259_v33  ;;  %v2186_v4 = vpack.i.bf16 %v1233_v60, %v1265_v36  ;;  %v1204_v13 = vld [vmem:[#allocation2 + $0x1] sm:$0xff]  ;;  %v1240_v33 = vld [vmem:[#allocation2 + $0x10] sm:$0xff]  ;;  %v1241_v60 = vld [vmem:[#allocation2 + $0x18] sm:$0xff] }
 0x39b   :  { %2162 = vrot.lane.b32.xlu1 %v2161_v38, %s2196_s25  ;;  %v1209_v11 = vmul.f32 %v1204_v13, %v2403_v53 }
 0x39c   :  { %1958 = vmatmul.mubr.msk.f32.gmra.mxu0 %vm146_vm2, %v1272_v48 }
 0x39e   :  { %2172 = vrot.lane.b32.xlu0 %v2171_v49, %s2197_s26 }
 0x39f   :  { %2167 = vrot.lane.b32.xlu1 %v2166_v57, %s2195_s24 }
 0x3a2   :  { %2177 = vrot.lane.b32.xlu0 %v2176_v0, %s2196_s25 }
 0x3a3   :  { %2182 = vrot.lane.b32.xlu1 %v2181_v62, %s2197_s26 }
 0x3a6   :  { %2187 = vrot.lane.b32.xlu0 %v2186_v4, %s2195_s24 }
 0x3fa   :  { %v2118_v6 = vpop.permute.xlu0 %2117 }
 0x3fb   :  { %v2120_v17 = vunpack.i.h.bf16 %v2118_v6  ;;  %v2119_v18 = vunpack.i.l.bf16 %v2118_v6 }
 0x3fd   :  { %v2128_v56 = vpop.permute.xlu1 %2127 }
 0x3fe   :  { %v2123_v8 = vpop.permute.xlu0 %2122  ;;  %v2130_v14 = vunpack.i.h.bf16 %v2128_v56  ;;  %v2129_v16 = vunpack.i.l.bf16 %v2128_v56  ;;  %v1212_v56 = vmul.f32 %v3001_v5, %v2513_v1 }
 0x3ff   :  { %v2125_v23 = vunpack.i.h.bf16 %v2123_v8  ;;  %v2124_v27 = vunpack.i.l.bf16 %v2123_v8 }
 0x401   :  { %v2133_v9 = vpop.permute.xlu1 %2132  ;;  %v1393_v20 = vsel %vm146_vm2, %v1209_v11, %v2125_v23  ;;  %v1408_v25 = vsel %vm146_vm2, %v1239_v19, %v2124_v27 }
 0x402   :  { %v1413_v21 = vsel %vm478_vm7, %v1408_v25, %v2129_v16  ;;  %v1398_v24 = vsel %vm478_vm7, %v1393_v20, %v2130_v14  ;;  %v2135_v41 = vunpack.i.h.bf16 %v2133_v9  ;;  %v2134_v22 = vunpack.i.l.bf16 %v2133_v9  ;;  %v1242_v14 = vld [vmem:[#allocation2 + $0x20] sm:$0xff] }
 0x403   :  { %v1418_v28 = vsel %vm484_vm8, %v1413_v21, %v2119_v18  ;;  %v1403_v29 = vsel %vm484_vm8, %v1398_v24, %v2120_v17 }
 0x404   :  { %v2143_v34 = vpop.permute.xlu0 %2142  ;;  %1538 = vmatprep.mubr.f32.mxu1 %v1418_v28 }
 0x405   :  { %v2138_v53 = vpop.permute.xlu1 %2137  ;;  %1539 = vmatmul.mubr.f32.vlgmr.msra.gmra.mxu1 %v1403_v29  ;;  %v2145_v32 = vunpack.i.h.bf16 %v2143_v34  ;;  %v2144_v39 = vunpack.i.l.bf16 %v2143_v34  ;;  %v1243_v29 = vld [vmem:[#allocation2 + $0x28] sm:$0xf] }
 0x406   :  { %v2140_v30 = vunpack.i.h.bf16 %v2138_v53  ;;  %v2139_v31 = vunpack.i.l.bf16 %v2138_v53  ;;  %v1208_v53 = vld [vmem:[#allocation2 + $0x21] sm:$0xf] }
 0x408   :  { %v2148_v40 = vpop.permute.xlu0 %2147  ;;  %v1409_v38 = vsel %vm146_vm2, %v1240_v33, %v2139_v31  ;;  %v1394_v44 = vsel %vm146_vm2, %v1210_v10, %v2140_v30 }
 0x409   :  { %v2158_v46 = vpop.permute.xlu1 %2157  ;;  %v1414_v47 = vsel %vm478_vm7, %v1409_v38, %v2144_v39  ;;  %v1399_v49 = vsel %vm478_vm7, %v1394_v44, %v2145_v32  ;;  %v2150_v3 = vunpack.i.h.bf16 %v2148_v40  ;;  %v2149_v48 = vunpack.i.l.bf16 %v2148_v40 }
 0x40a   :  { %v1419_v63 = vsel %vm484_vm8, %v1414_v47, %v2134_v22  ;;  %v1404_v45 = vsel %vm484_vm8, %v1399_v49, %v2135_v41  ;;  %v2160_v58 = vunpack.i.h.bf16 %v2158_v46  ;;  %v2159_v54 = vunpack.i.l.bf16 %v2158_v46 }
 0x40b   :  { %1543 = vmatprep.mubr.f32.mxu1 %v1419_v63 }
 0x40c   :  { %v2153_v12 = vpop.permute.xlu0 %2152  ;;  %1544 = vmatmul.mubr.f32.gmra.mxu1 %v1404_v45 }
 0x40d   :  { %v2155_v55 = vunpack.i.h.bf16 %v2153_v12  ;;  %v2154_v57 = vunpack.i.l.bf16 %v2153_v12  ;;  %v2163_v0 = vpop.permute.xlu1 %2162 }
 0x40e   :  { %v2165_v36 = vunpack.i.h.bf16 %v2163_v0  ;;  %v2164_v62 = vunpack.i.l.bf16 %v2163_v0  ;;  %v2191_v0 = vld [vmem:[%s3104_s4 + $0x1] ss:$0 sm:$0xff] }
 0x40f   :  { %v1410_v4 = vsel %vm146_vm2, %v1241_v60, %v2154_v57  ;;  %v1395_v6 = vsel %vm146_vm2, %v1211_v51, %v2155_v55 }
 0x410   :  { %v2173_v13 = vpop.permute.xlu0 %2172  ;;  %v1415_v35 = vsel %vm478_vm7, %v1410_v4, %v2159_v54  ;;  %v1400_v7 = vsel %vm478_vm7, %v1395_v6, %v2160_v58  ;;  %v1411_v9 = vsel %vm146_vm2, %v1242_v14, %v2164_v62  ;;  %v1396_v19 = vsel %vm146_vm2, %v1212_v56, %v2165_v36 }
 0x411   :  { %v2175_v8 = vunpack.i.h.bf16 %v2173_v13  ;;  %v2174_v23 = vunpack.i.l.bf16 %v2173_v13  ;;  %v1420_v27 = vsel %vm484_vm8, %v1415_v35, %v2149_v48  ;;  %v1405_v11 = vsel %vm484_vm8, %v1400_v7, %v2150_v3  ;;  %v2168_v16 = vpop.permute.xlu1 %2167 }
 0x412   :  { %1548 = vmatprep.mubr.f32.mxu1 %v1420_v27  ;;  %v2170_v17 = vunpack.i.h.bf16 %v2168_v16  ;;  %v2169_v1 = vunpack.i.l.bf16 %v2168_v16 }
 0x413   :  { %1549 = vmatmul.mubr.f32.gmra.mxu1 %v1405_v11  ;;  %v1416_v5 = vsel %vm478_vm7, %v1411_v9, %v2174_v23  ;;  %v1401_v18 = vsel %vm478_vm7, %v1396_v19, %v2175_v8 }
 0x414   :  { %v2178_v20 = vpop.permute.xlu0 %2177  ;;  %v1421_v21 = vsel %vm484_vm8, %v1416_v5, %v2169_v1  ;;  %v1406_v24 = vsel %vm484_vm8, %v1401_v18, %v2170_v17 }
 0x415   :  { %v2180_v25 = vunpack.i.h.bf16 %v2178_v20  ;;  %v2179_v34 = vunpack.i.l.bf16 %v2178_v20  ;;  %v2183_v28 = vpop.permute.xlu1 %2182  ;;  %1553 = vmatprep.mubr.f32.mxu1 %v1421_v21 }
 0x416   :  { %v2185_v10 = vunpack.i.h.bf16 %v2183_v28  ;;  %v2184_v30 = vunpack.i.l.bf16 %v2183_v28 }
 0x417   :  { %1554 = vmatmul.mubr.f32.gmra.mxu1 %v1406_v24  ;;  %v1412_v31 = vsel %vm146_vm2, %v1243_v29, %v2179_v34  ;;  %v1397_v32 = vsel %vm146_vm2, %v1208_v53, %v2180_v25 }
 0x418   :  { %v2188_v39 = vpop.permute.xlu0 %2187  ;;  %v1417_v41 = vsel %vm478_vm7, %v1412_v31, %v2184_v30  ;;  %v1402_v22 = vsel %vm478_vm7, %v1397_v32, %v2185_v10 }
 0x419   :  { %v2190_v40 = vunpack.i.h.bf16 %v2188_v39  ;;  %v2189_v33 = vunpack.i.l.bf16 %v2188_v39 }
 0x41b   :  { %v1422_v38 = vsel %vm484_vm8, %v1417_v41, %v2189_v33  ;;  %v1407_v44 = vsel %vm484_vm8, %v1402_v22, %v2190_v40 }
 0x41c   :  { %1558 = vmatprep.mubr.f32.mxu1 %v1422_v38 }
 0x41d   :  { %1559 = vmatmul.mubr.f32.gmra.mxu1 %v1407_v44 }
 0x447   :  { %v1630_v46 = vpop.f32.mrf.mxu0 }
 0x449   :  { %v1947_v47 = vpop.f32.mrf.mxu0 }
 0x44e   :  { %v1635_v49 = vpop.f32.mrf.mxu0 }
 0x450   :  { %v1950_v63 = vpop.f32.mrf.mxu0 }
 0x452   :  { %v1640_v45 = vpop.f32.mrf.mxu0 }
 0x454   :  { %v1953_v12 = vpop.f32.mrf.mxu0 }
 0x458   :  { %v1645_v51 = vpop.f32.mrf.mxu0 }
 0x45a   :  { %v1956_v55 = vpop.f32.mrf.mxu0 }
 0x45c   :  { %v1650_v57 = vpop.f32.mrf.mxu0 }
 0x45e   :  { %v1959_v3 = vpop.f32.mrf.mxu0 }
 0x4c5   :  { %v1848_v48 = vpop.f32.mrf.mxu1 }
 0x4c7   :  { %v1849_v58 = vpop.f32.mrf.mxu1 }
 0x4c8   :  { %v1850_v54 = vadd.f32 %v1849_v58, %v1848_v48 }
 0x4ca   :  { %v1541_v60 = vadd.f32 %v2191_v0, %v1850_v54 }
 0x4cc   :  { %v1851_v36 = vpop.f32.mrf.mxu1  ;;  %v1631_v62 = vadd.f32 %v1630_v46, %v1541_v60 }
 0x4ce   :  { %v1852_v4 = vpop.f32.mrf.mxu1  ;;  %v1654_v6 = vadd.f32 %v1631_v62, %v2913_v52 }
 0x4cf   :  { %v1853_v56 = vadd.f32 %v1852_v4, %v1851_v36 }
 0x4d0   :  { %v1659_v13 = vadd.f32 %v1654_v6, %v2369_v37 }
 0x4d1   :  { %v1546_v35 = vadd.f32 %v2191_v0, %v1853_v56 }
 0x4d2   :  { %1664 = vst.msk [vmem:[%s3106_s5] sm:$0xff] %vm146_vm2, %v1659_v13 }
 0x4d3   :  { %v1854_v7 = vpop.f32.mrf.mxu1  ;;  %v1636_v8 = vadd.f32 %v1635_v49, %v1546_v35 }
 0x4d5   :  { %v1855_v23 = vpop.f32.mrf.mxu1  ;;  %v1655_v27 = vadd.f32 %v1636_v8, %v2925_v59 }
 0x4d6   :  { %v1856_v11 = vadd.f32 %v1855_v23, %v1854_v7 }
 0x4d7   :  { %v1857_v14 = vpop.f32.mrf.mxu1  ;;  %v1660_v16 = vadd.f32 %v1655_v27, %v2382_v42 }
 0x4d8   :  { %v1551_v9 = vadd.f32 %v2191_v0, %v1856_v11 }
 0x4d9   :  { %v1858_v52 = vpop.f32.mrf.mxu1  ;;  %1665 = vst.msk [vmem:[%s3106_s5 + $0x8] sm:$0xff] %vm146_vm2, %v1660_v16 }
 0x4da   :  { %v1641_v37 = vadd.f32 %v1640_v45, %v1551_v9  ;;  %v1859_v19 = vadd.f32 %v1858_v52, %v1857_v14 }
 0x4dc   :  { %v1656_v17 = vadd.f32 %v1641_v37, %v2946_v26  ;;  %v1556_v1 = vadd.f32 %v2191_v0, %v1859_v19 }
 0x4dd   :  { %v1860_v5 = vpop.f32.mrf.mxu1 }
 0x4de   :  { %v1661_v18 = vadd.f32 %v1656_v17, %v2400_v50  ;;  %v1646_v59 = vadd.f32 %v1645_v51, %v1556_v1 }
 0x4df   :  { %v1861_v20 = vpop.f32.mrf.mxu1 }
 0x4e0   :  { %1666 = vst.msk [vmem:[%s3106_s5 + $0x10] sm:$0xff] %vm146_vm2, %v1661_v18  ;;  %v1657_v42 = vadd.f32 %v1646_v59, %v2963_v43  ;;  %v1862_v25 = vadd.f32 %v1861_v20, %v1860_v5 }
 0x4e2   :  { %v1662_v34 = vadd.f32 %v1657_v42, %v2424_v61  ;;  %v1561_v21 = vadd.f32 %v2191_v0, %v1862_v25 }
 0x4e4   :  { %1667 = vst.msk [vmem:[%s3106_s5 + $0x18] sm:$0xff] %vm146_vm2, %v1662_v34  ;;  %v1651_v26 = vadd.f32 %v1650_v57, %v1561_v21 }
 0x4e6   :  { %v1658_v50 = vadd.f32 %v1651_v26, %v2982_v2 }
 0x4e8   :  { %v1663_v24 = vadd.f32 %v1658_v50, %v2447_v15 }
 0x4ea   :  { %1668 = vst.msk [vmem:[%s3106_s5 + $0x20] sm:$0xf] %vm153_vm4, %v1663_v24 }

</bundles_post_ra>
